<compile_context>
chip_gen: v6e
topology: v6e:2x2x1
jax: 0.10.0
libtpu: 0.0.40
codegen_flags: <defaults>
</compile_context>

<pallas_src>
import functools

import jax
import jax.numpy as jnp
from jax.experimental import pallas as pl
from jax.experimental.pallas import tpu as pltpu

BN_EPS = 1e-5
_LANE = 128
_MIB = 1024 * 1024


# --------------------------------------------------------------------------
# generation-aware VMEM budgeting & tile selection
# --------------------------------------------------------------------------
def _tpu_vmem_capacity_bytes():
    try:
        cap = getattr(pltpu.get_tpu_info(), "vmem_capacity_bytes", None)
        if cap:
            return int(cap)
    except Exception:
        pass
    return 64 * _MIB  # conservative fallback (v7x per-core physical VMEM)


def _divisor_candidates(cands, n):
    return [t for t in cands if t <= n and n % t == 0]


def _pick_agg_tiles(n, c_h, c_out_max, a_bytes, h_bytes, budget,
                    tile_m=None, tile_k=None):
    """Pick (tile_m, tile_k, h_resident) for the A@H aggregation kernel."""
    row_cands = _divisor_candidates((512, 256, 128), n) or [n]
    # keep >=2 row tiles when possible so the "parallel" axis can shard across
    # v7x's two TensorCores (no-op on v5e/v6e, which have 1 TC).
    row_cands = [t for t in row_cands if n // t >= 2] or row_cands
    k_cands = _divisor_candidates((2048, 1024, 512, 256, 128), n) or [n]
    if tile_m is not None:
        assert n % tile_m == 0, "tile_m must divide the (padded) node count"
        row_cands = [tile_m]
    if tile_k is not None:
        assert n % tile_k == 0, "tile_k must divide the (padded) node count"
        k_cands = [tile_k]

    h_res_cost = 2 * n * c_h * h_bytes  # resident H (2x: pipeline-buffer headroom)

    def usage(tm, tk, h_res):
        u = 2 * tm * tk * a_bytes                      # A tile, double-buffered
        u += h_res_cost if h_res else 2 * tk * c_h * h_bytes
        u += 2 * tm * c_out_max * 4                    # out tile (worst-case f32)
        u += tm * c_h * 4                              # f32 accumulator
        u += 2 * c_h * c_out_max * h_bytes             # fused next-layer weight
        return u

    for h_res in (True, False):
        for tm in row_cands:
            for tk in k_cands:
                if usage(tm, tk, h_res) <= budget:
                    return tm, tk, h_res
    return row_cands[-1], k_cands[-1], False


# --------------------------------------------------------------------------
# Kernel 1: H0 = X @ W_eff  (only the first layer needs an explicit X@W kernel;
# later layers get their X@W fused into the previous aggregation's epilogue)
# --------------------------------------------------------------------------
def _xw_kernel(x_ref, w_ref, o_ref):
    x = x_ref[...].astype(w_ref.dtype)
    o_ref[...] = jnp.dot(x, w_ref[...],
                         preferred_element_type=jnp.float32).astype(o_ref.dtype)


def xw_matmul(x, w, *, out_dtype, tile_m, vmem_limit):
    n, c_in = x.shape
    c_out = w.shape[1]
    assert n % tile_m == 0
    flops = 2 * n * c_in * c_out
    bytes_acc = int(x.size) * x.dtype.itemsize + int(w.size) * w.dtype.itemsize \
        + n * c_out * jnp.dtype(out_dtype).itemsize
    return pl.pallas_call(
        _xw_kernel,
        out_shape=jax.ShapeDtypeStruct((n, c_out), out_dtype),
        grid_spec=pltpu.PrefetchScalarGridSpec(
            num_scalar_prefetch=0,
            grid=(n // tile_m,),
            in_specs=[
                pl.BlockSpec((tile_m, c_in), lambda i: (i, 0)),
                pl.BlockSpec((c_in, c_out), lambda i: (0, 0)),
            ],
            out_specs=pl.BlockSpec((tile_m, c_out), lambda i: (i, 0)),
        ),
        compiler_params=pltpu.CompilerParams(
            dimension_semantics=("parallel",),
            vmem_limit_bytes=vmem_limit),
        cost_estimate=pl.CostEstimate(flops=int(flops), transcendentals=0,
                                      bytes_accessed=int(bytes_acc)),
    )(x, w)


# --------------------------------------------------------------------------
# Kernel 2: aggregation  z = A_hat @ H + shift   (K-tiled, f32 accumulation)
#   * fuse_next:  out = relu(z) @ W_next          (next layer's X@W in epilogue)
#   * emit_mid:   also emit z (pre-ReLU conv[-2] output, f32) for the mode branch
#   * otherwise:  out = (relu?)(z)   — accumulated directly in the f32 output
# --------------------------------------------------------------------------
def _agg_kernel(a_ref, h_ref, s_ref, *rest, tile_k, relu, fuse_next, emit_mid,
                h_resident):
    pos = 0
    wn_ref = None
    if fuse_next:
        wn_ref = rest[pos]
        pos += 1
    out_ref = rest[pos]
    pos += 1
    mid_ref = None
    if emit_mid:
        mid_ref = rest[pos]
        pos += 1
    if fuse_next and not emit_mid:
        acc = rest[pos]            # dedicated f32 VMEM scratch
    elif emit_mid:
        acc = mid_ref              # f32 mid output doubles as the accumulator
    else:
        acc = out_ref              # f32 final output doubles as the accumulator

    k = pl.program_id(1)

    @pl.when(k == 0)
    def _():
        acc[...] = jnp.zeros_like(acc)

    if h_resident:
        off = pl.multiple_of(k * tile_k, tile_k)
        h = h_ref[pl.ds(off, tile_k), :]
    else:
        h = h_ref[...]
    acc[...] += jnp.dot(a_ref[...], h, preferred_element_type=jnp.float32)

    @pl.when(k == pl.num_programs(1) - 1)
    def _():
        z = acc[...] + s_ref[...]
        if fuse_next:
            if emit_mid:
                mid_ref[...] = z                       # pre-ReLU conv[-2] output
            # inter-layer ReLU (dropout eval = identity) + next layer's X@W
            zr = jnp.maximum(z, 0.0).astype(wn_ref.dtype)
            out_ref[...] = jnp.dot(
                zr, wn_ref[...],
                preferred_element_type=jnp.float32).astype(out_ref.dtype)
        else:
            if relu:
                z = jnp.maximum(z, 0.0)
            out_ref[...] = z.astype(out_ref.dtype)


def adj_aggregate(a_hat, h, shift, *, relu=False, w_next=None, emit_mid=False,
                  tile_m, tile_k, h_resident, vmem_limit,
                  out_dtype=jnp.float32):
    n = a_hat.shape[0]
    c = h.shape[1]
    fuse_next = w_next is not None
    assert n % tile_m == 0 and n % tile_k == 0

    in_list = [a_hat, h, shift]
    if h_resident:
        h_spec = pl.BlockSpec((n, c), lambda i, k: (0, 0))       # resident H
    else:
        h_spec = pl.BlockSpec((tile_k, c), lambda i, k: (k, 0))
    in_specs = [
        pl.BlockSpec((tile_m, tile_k), lambda i, k: (i, k)),     # A tile
        h_spec,
        pl.BlockSpec((1, c), lambda i, k: (0, 0)),               # shift
    ]
    if fuse_next:
        in_list.append(w_next)
        in_specs.append(pl.BlockSpec(w_next.shape, lambda i, k: (0, 0)))

    scratch_shapes = []
    if fuse_next:
        c_next = w_next.shape[1]
        out_shapes = [jax.ShapeDtypeStruct((n, c_next), w_next.dtype)]
        out_specs = [pl.BlockSpec((tile_m, c_next), lambda i, k: (i, 0))]
        if emit_mid:
            out_shapes.append(jax.ShapeDtypeStruct((n, c), jnp.float32))
            out_specs.append(pl.BlockSpec((tile_m, c), lambda i, k: (i, 0)))
        else:
            scratch_shapes.append(pltpu.VMEM((tile_m, c), jnp.float32))
    else:
        out_shapes = [jax.ShapeDtypeStruct((n, c), out_dtype)]
        out_specs = [pl.BlockSpec((tile_m, c), lambda i, k: (i, 0))]

    c_w = w_next.shape[1] if fuse_next else c
    flops = 2 * n * n * c + (2 * n * c * c_w if fuse_next else 0)
    h_reads = 1 if h_resident else max(1, n // tile_m)
    bytes_acc = (int(a_hat.size) * a_hat.dtype.itemsize
                 + int(h.size) * h.dtype.itemsize * h_reads
                 + n * c_w * jnp.dtype(out_shapes[0].dtype).itemsize
                 + (n * c * 4 if emit_mid else 0))

    kern = functools.partial(_agg_kernel, tile_k=tile_k, relu=relu,
                             fuse_next=fuse_next, emit_mid=emit_mid,
                             h_resident=h_resident)
    single = len(out_shapes) == 1
    return pl.pallas_call(
        kern,
        out_shape=out_shapes[0] if single else tuple(out_shapes),
        grid_spec=pltpu.PrefetchScalarGridSpec(
            num_scalar_prefetch=0,
            grid=(n // tile_m, n // tile_k),          # reduction axis last
            in_specs=in_specs,
            out_specs=out_specs[0] if single else tuple(out_specs),
            scratch_shapes=scratch_shapes,
        ),
        compiler_params=pltpu.CompilerParams(
            dimension_semantics=("parallel", "arbitrary"),
            vmem_limit_bytes=vmem_limit),
        cost_estimate=pl.CostEstimate(flops=int(flops), transcendentals=0,
                                      bytes_accessed=int(bytes_acc)),
    )(*in_list)


# --------------------------------------------------------------------------
# Kernel 3: fully fused layer stack (small graphs: everything fits in VMEM)
# --------------------------------------------------------------------------
def _fused_stack_kernel(a_ref, x_ref, *rest, num_layers, return_mid,
                        compute_dtype):
    ws = rest[:2 * num_layers]          # (w0, s0, w1, s1, ...)
    outs = rest[2 * num_layers:]        # (out_final, [out_mid])
    a = a_ref[...]                      # compute_dtype
    x = x_ref[...].astype(compute_dtype)
    for li in range(num_layers):
        w = ws[2 * li][...]             # compute_dtype (BN scale folded in)
        s = ws[2 * li + 1][...]         # f32 shift
        h = jnp.dot(x, w, preferred_element_type=jnp.float32).astype(compute_dtype)
        z = jnp.dot(a, h, preferred_element_type=jnp.float32) + s
        if return_mid and li == num_layers - 2:
            outs[1][...] = z.astype(outs[1].dtype)   # pre-ReLU conv[-2] output
            x = jnp.maximum(z, 0.0).astype(compute_dtype)
        elif li < num_layers - 1:
            x = jnp.maximum(z, 0.0).astype(compute_dtype)
        else:
            outs[0][...] = z.astype(outs[0].dtype)


def gcn_fused_stack(a_hat, x, layers, *, return_mid, compute_dtype, vmem_limit):
    n = a_hat.shape[0]
    num_layers = len(layers)
    c_final = layers[-1][0].shape[1]

    flat_inputs = [a_hat, x]
    in_specs = [
        pl.BlockSpec((n, n), lambda i: (0, 0)),
        pl.BlockSpec((n, x.shape[1]), lambda i: (0, 0)),
    ]
    flops = 0
    for (w, s) in layers:
        flat_inputs += [w, s]
        in_specs += [
            pl.BlockSpec(w.shape, lambda i: (0, 0)),
            pl.BlockSpec(s.shape, lambda i: (0, 0)),
        ]
        flops += 2 * n * w.shape[0] * w.shape[1] + 2 * n * n * w.shape[1]

    if return_mid:
        c_mid = layers[-2][0].shape[1]
        out_shape = (jax.ShapeDtypeStruct((n, c_final), jnp.float32),
                     jax.ShapeDtypeStruct((n, c_mid), jnp.float32))
        out_specs = (pl.BlockSpec((n, c_final), lambda i: (0, 0)),
                     pl.BlockSpec((n, c_mid), lambda i: (0, 0)))
    else:
        out_shape = jax.ShapeDtypeStruct((n, c_final), jnp.float32)
        out_specs = pl.BlockSpec((n, c_final), lambda i: (0, 0))

    bytes_acc = sum(int(v.size) * v.dtype.itemsize for v in flat_inputs) \
        + n * c_final * 4
    kern = functools.partial(_fused_stack_kernel, num_layers=num_layers,
                             return_mid=return_mid, compute_dtype=compute_dtype)
    return pl.pallas_call(
        kern,
        out_shape=out_shape,
        grid_spec=pltpu.PrefetchScalarGridSpec(
            num_scalar_prefetch=0,
            grid=(1,),
            in_specs=in_specs,
            out_specs=out_specs,
        ),
        compiler_params=pltpu.CompilerParams(
            dimension_semantics=("arbitrary",),
            vmem_limit_bytes=vmem_limit),
        cost_estimate=pl.CostEstimate(flops=int(flops), transcendentals=0,
                                      bytes_accessed=int(bytes_acc)),
    )(*flat_inputs)


# --------------------------------------------------------------------------
# Wrapper: BN/bias folding, padding, path selection
# --------------------------------------------------------------------------
def _fold_layers(params, mode, compute_dtype):
    """Fold eval-mode BatchNorm into each conv: out = A @ (X @ W_eff) + shift."""
    convs, bns = params["convs"], params["bns"]
    num_layers = len(convs)
    n_bn = (num_layers - 1) if not mode else (num_layers - 2)
    layers = []
    for li in range(num_layers):
        w, b = convs[li]
        if li < n_bn:
            g, be, m, v = bns[li]
            scale = g / jnp.sqrt(v + BN_EPS)        # (1, c_out), per-channel
            w_eff = w * scale                       # fold scale into W (one-time)
            shift = (b - m) * scale + be
        else:
            w_eff, shift = w, b
        layers.append((w_eff.astype(compute_dtype), shift.astype(jnp.float32)))
    return layers


def _fused_bytes_estimate(n, c_in, layers, cd_bytes):
    max_c = max([c_in] + [w.shape[1] for w, _ in layers])
    elems_cd = n * n + n * c_in + sum(int(w.size) for w, _ in layers)
    elems_f32 = sum(int(s.size) for _, s in layers) + 3 * n * max_c
    return 2 * (elems_cd * cd_bytes + elems_f32 * 4)   # 2x: pipeline buffers


def gcn_forward(x, a_hat, params, mode=None, *, compute_dtype=jnp.bfloat16,
                force_path=None, tile_m=None, tile_k=None):
    """Mirrors GCN.forward (eval mode: dropout = identity, BN uses running stats).

    compute_dtype defaults to bf16 (f32 accumulation) on all generations — the
    A@H kernel is HBM-bound on A, so bf16 halves its traffic and doubles MXU
    rate; pass jnp.float32 for tight-tolerance validation.
    """
    # TODO(synk): training-mode dropout (stochastic masking) not implemented; eval semantics used.
    layers = _fold_layers(params, mode, compute_dtype)
    num_layers = len(layers)
    n_orig = a_hat.shape[0]

    # Pad the node count to a multiple of 128 so tile sizes always divide N and
    # A tiles stay (8,128)-aligned. Padded rows/cols of A are zero -> they never
    # contribute to valid rows; padded output rows are sliced off below.
    n_pad = ((n_orig + _LANE - 1) // _LANE) * _LANE
    if n_pad != n_orig:
        pad = n_pad - n_orig
        a_hat = jnp.pad(a_hat, ((0, pad), (0, pad)))
        x = jnp.pad(x, ((0, pad), (0, 0)))
    n = n_pad
    a_c = a_hat.astype(compute_dtype)

    cap = _tpu_vmem_capacity_bytes()
    vmem_limit = int(min(cap * 0.8, cap - 8 * _MIB))
    tile_budget = int(cap * 0.55)
    fused_thresh = (32 * _MIB) if cap >= 100 * _MIB else (20 * _MIB)

    cd_bytes = jnp.dtype(compute_dtype).itemsize
    if force_path is None:
        use_fused = _fused_bytes_estimate(n, x.shape[1], layers,
                                          cd_bytes) <= fused_thresh
    else:
        use_fused = (force_path == "fused")

    if use_fused:
        # single pallas_call for the whole stack: no per-layer launches, no
        # intermediate HBM round trips.
        out = gcn_fused_stack(a_c, x, layers, return_mid=bool(mode),
                              compute_dtype=compute_dtype,
                              vmem_limit=vmem_limit)
        if mode:
            return out[0][:n_orig], out[1][:n_orig]
        return out[:n_orig]

    # ---- scalable tiled path ----
    c_h = max(w.shape[1] for w, _ in layers[:-1]) if num_layers > 1 \
        else layers[0][0].shape[1]
    c_out_max = max(w.shape[1] for w, _ in layers)
    tm, tk, h_res = _pick_agg_tiles(n, c_h, c_out_max, cd_bytes, cd_bytes,
                                    tile_budget, tile_m=tile_m, tile_k=tile_k)

    # layer 0 feature transform; later X@W's are fused into the agg epilogues.
    h = xw_matmul(x, layers[0][0], out_dtype=compute_dtype, tile_m=tm,
                  vmem_limit=vmem_limit)

    x_mid = None
    for li in range(num_layers - 1):
        shift = layers[li][1]
        w_next = layers[li + 1][0]
        emit_mid = bool(mode) and (li == num_layers - 2)
        res = adj_aggregate(a_c, h, shift, w_next=w_next, emit_mid=emit_mid,
                            tile_m=tm, tile_k=tk, h_resident=h_res,
                            vmem_limit=vmem_limit)
        if emit_mid:
            h, x_mid = res
        else:
            h = res

    out = adj_aggregate(a_c, h, layers[-1][1], relu=False,
                        tile_m=tm, tile_k=tk, h_resident=h_res,
                        vmem_limit=vmem_limit)
    if mode:
        return out[:n_orig], x_mid[:n_orig]
    return out[:n_orig]


# --------------------------------------------------------------------------
# parameter / data construction and pure-JAX references
# --------------------------------------------------------------------------
def make_params(key, in_channels, hidden_channels, out_channels, num_layers):
    dims = [in_channels] + [hidden_channels] * (num_layers - 1) + [out_channels]
    convs, bns = [], []
    for li in range(num_layers):
        key, kw = jax.random.split(key)
        fan_in, fan_out = dims[li], dims[li + 1]
        limit = (6.0 / (fan_in + fan_out)) ** 0.5  # glorot uniform
        w = jax.random.uniform(kw, (fan_in, fan_out), jnp.float32, -limit, limit)
        b = jnp.zeros((1, fan_out), jnp.float32)
        convs.append((w, b))
        if li < num_layers - 1:
            key, k1, k2, k3, k4 = jax.random.split(key, 5)
            gamma = jax.random.uniform(k1, (1, fan_out), jnp.float32, 0.5, 1.5)
            beta = jax.random.uniform(k2, (1, fan_out), jnp.float32, -0.1, 0.1)
            mean = jax.random.uniform(k3, (1, fan_out), jnp.float32, -0.5, 0.5)
            var = jax.random.uniform(k4, (1, fan_out), jnp.float32, 0.5, 1.5)
            bns.append((gamma, beta, mean, var))
    return {"convs": convs, "bns": bns}


def build_normalized_adj(key, n):
    u = jax.random.uniform(key, (n, n), jnp.float32)
    a = (u < 0.05).astype(jnp.float32)
    a = jnp.maximum(a, a.T)                        # symmetrize
    a = a * (1.0 - jnp.eye(n, dtype=jnp.float32))  # drop self edges
    a_tilde = a + jnp.eye(n, dtype=jnp.float32)    # add self loops
    deg = a_tilde.sum(axis=1)
    d_inv_sqrt = 1.0 / jnp.sqrt(deg)
    return d_inv_sqrt[:, None] * a_tilde * d_inv_sqrt[None, :]


def ref_forward(x, a_hat, params):
    convs, bns = params["convs"], params["bns"]
    for i in range(len(convs) - 1):
        w, b = convs[i]
        g, be, m, v = bns[i]
        x = a_hat @ (x @ w) + b
        x = (x - m) / jnp.sqrt(v + BN_EPS) * g + be
        x = jnp.maximum(x, 0.0)
    w, b = convs[-1]
    return a_hat @ (x @ w) + b


def ref_forward_mode(x, a_hat, params):
    convs, bns = params["convs"], params["bns"]
    for i in range(len(convs) - 2):
        w, b = convs[i]
        g, be, m, v = bns[i]
        x = a_hat @ (x @ w) + b
        x = (x - m) / jnp.sqrt(v + BN_EPS) * g + be
        x = jnp.maximum(x, 0.0)
    w, b = convs[-2]
    x_mid = a_hat @ (x @ w) + b
    x2 = jnp.maximum(x_mid, 0.0)
    w, b = convs[-1]
    return a_hat @ (x2 @ w) + b, x_mid


if __name__ == "__main__":
    N = 256
    IN_C, HID_C, OUT_C = 32, 64, 16
    NUM_LAYERS = 3

    key = jax.random.PRNGKey(0)
    k_adj, k_x, k_p = jax.random.split(key, 3)

    a_hat = build_normalized_adj(k_adj, N)
    x = jax.random.normal(k_x, (N, IN_C), jnp.float32)
    params = make_params(k_p, IN_C, HID_C, OUT_C, NUM_LAYERS)

    ref = ref_forward(x, a_hat, params)
    ref_fin_m, ref_mid_m = ref_forward_mode(x, a_hat, params)

    def _check(out, expect, tol, name):
        out = jax.block_until_ready(out)
        assert out.shape == expect.shape, name + " shape"
        assert jnp.allclose(out, expect, rtol=tol, atol=tol), name

    # f32 compute: exact-semantics check on both paths (tight tolerance)
    _check(gcn_forward(x, a_hat, params, compute_dtype=jnp.float32,
                       force_path="fused"), ref, 1e-3, "f32 fused")
    _check(gcn_forward(x, a_hat, params, compute_dtype=jnp.float32,
                       force_path="tiled"), ref, 1e-3, "f32 tiled")

    # bf16 compute (default): halves A/H HBM traffic, doubles MXU rate; f32 acc.
    _check(gcn_forward(x, a_hat, params, force_path="fused"),
           ref, 6e-2, "bf16 fused")
    _check(gcn_forward(x, a_hat, params, force_path="tiled"),
           ref, 6e-2, "bf16 tiled")

    # mode branch (returns (x_final, pre-ReLU conv[-2] output)), both paths
    mf, mm = gcn_forward(x, a_hat, params, mode="emb",
                         compute_dtype=jnp.float32, force_path="fused")
    _check(mf, ref_fin_m, 1e-3, "f32 fused mode final")
    _check(mm, ref_mid_m, 1e-3, "f32 fused mode mid")
    tfin, tmid = gcn_forward(x, a_hat, params, mode="emb",
                             compute_dtype=jnp.float32, force_path="tiled")
    _check(tfin, ref_fin_m, 1e-3, "f32 tiled mode final")
    _check(tmid, ref_mid_m, 1e-3, "f32 tiled mode mid")
    bfin, bmid = gcn_forward(x, a_hat, params, mode="emb", force_path="tiled")
    _check(bfin, ref_fin_m, 6e-2, "bf16 tiled mode final")
    _check(bmid, ref_mid_m, 6e-2, "bf16 tiled mode mid")

    # irregular node count (exercises zero-padding on the tiled path)
    N2 = 200
    a2 = build_normalized_adj(k_adj, N2)
    x2 = jax.random.normal(k_x, (N2, IN_C), jnp.float32)
    _check(gcn_forward(x2, a2, params, compute_dtype=jnp.float32,
                       force_path="tiled"),
           ref_forward(x2, a2, params), 1e-3, "f32 tiled padded N")

    print("KERNEL_OK")
</pallas_src>

<mosaic_0001>
module attributes {stable_mosaic.version = 11 : i64} {
  func.func @_fused_stack_kernel(%arg0: i32, %arg1: memref<256x256xf32, #tpu.memory_space<vmem>>, %arg2: memref<256x32xf32, #tpu.memory_space<vmem>>, %arg3: memref<32x64xf32, #tpu.memory_space<vmem>>, %arg4: memref<1x64xf32, #tpu.memory_space<vmem>>, %arg5: memref<64x64xf32, #tpu.memory_space<vmem>>, %arg6: memref<1x64xf32, #tpu.memory_space<vmem>>, %arg7: memref<64x16xf32, #tpu.memory_space<vmem>>, %arg8: memref<1x16xf32, #tpu.memory_space<vmem>>, %arg9: memref<256x16xf32, #tpu.memory_space<vmem>>) attributes {dimension_semantics = [#tpu.dimension_semantics<arbitrary>], iteration_bounds = array<i64: 1>, scalar_prefetch = 0 : i64, scratch_operands = 0 : i64, tpu.core_type = #tpu.core_type<tc>, window_params = [{pipeline_mode = #tpu.pipeline_mode<synchronous>, transform_indices = @transform_0, window_bounds = array<i64: 256, 256>}, {pipeline_mode = #tpu.pipeline_mode<synchronous>, transform_indices = @transform_1, window_bounds = array<i64: 256, 32>}, {pipeline_mode = #tpu.pipeline_mode<synchronous>, transform_indices = @transform_2, window_bounds = array<i64: 32, 64>}, {pipeline_mode = #tpu.pipeline_mode<synchronous>, transform_indices = @transform_3, window_bounds = array<i64: 1, 64>}, {pipeline_mode = #tpu.pipeline_mode<synchronous>, transform_indices = @transform_4, window_bounds = array<i64: 64, 64>}, {pipeline_mode = #tpu.pipeline_mode<synchronous>, transform_indices = @transform_5, window_bounds = array<i64: 1, 64>}, {pipeline_mode = #tpu.pipeline_mode<synchronous>, transform_indices = @transform_6, window_bounds = array<i64: 64, 16>}, {pipeline_mode = #tpu.pipeline_mode<synchronous>, transform_indices = @transform_7, window_bounds = array<i64: 1, 16>}, {pipeline_mode = #tpu.pipeline_mode<synchronous>, transform_indices = @transform_8, window_bounds = array<i64: 256, 16>}]} {
    %c0 = arith.constant 0 : index
    %c0_0 = arith.constant 0 : index
    %0 = vector.load %arg1[%c0, %c0_0] : memref<256x256xf32, #tpu.memory_space<vmem>>, vector<256x256xf32>
    %c0_1 = arith.constant 0 : index
    %c0_2 = arith.constant 0 : index
    %1 = vector.load %arg2[%c0_1, %c0_2] : memref<256x32xf32, #tpu.memory_space<vmem>>, vector<256x32xf32>
    %c0_3 = arith.constant 0 : index
    %c0_4 = arith.constant 0 : index
    %2 = vector.load %arg3[%c0_3, %c0_4] : memref<32x64xf32, #tpu.memory_space<vmem>>, vector<32x64xf32>
    %c0_5 = arith.constant 0 : index
    %c0_6 = arith.constant 0 : index
    %3 = vector.load %arg4[%c0_5, %c0_6] : memref<1x64xf32, #tpu.memory_space<vmem>>, vector<1x64xf32>
    %cst = arith.constant dense<0.000000e+00> : vector<256x64xf32>
    %4 = tpu.matmul %1, %2, %cst {dimension_numbers = #tpu.dot_dimension_numbers<[1], [0], [0], [1], [0, 0, 1, 1], [], []>} : vector<256x32xf32>, vector<32x64xf32>, vector<256x64xf32> -> vector<256x64xf32>
    %cst_7 = arith.constant dense<0.000000e+00> : vector<256x64xf32>
    %5 = tpu.matmul %0, %4, %cst_7 {dimension_numbers = #tpu.dot_dimension_numbers<[1], [0], [0], [1], [0, 0, 1, 1], [], []>} : vector<256x256xf32>, vector<256x64xf32>, vector<256x64xf32> -> vector<256x64xf32>
    %6 = vector.broadcast %3 : vector<1x64xf32> to vector<256x64xf32>
    %7 = arith.addf %5, %6 : vector<256x64xf32>
    %cst_8 = arith.constant 0.000000e+00 : f32
    %8 = vector.broadcast %cst_8 : f32 to vector<256x64xf32>
    %9 = arith.maximumf %7, %8 : vector<256x64xf32>
    %c0_9 = arith.constant 0 : index
    %c0_10 = arith.constant 0 : index
    %10 = vector.load %arg5[%c0_9, %c0_10] : memref<64x64xf32, #tpu.memory_space<vmem>>, vector<64x64xf32>
    %c0_11 = arith.constant 0 : index
    %c0_12 = arith.constant 0 : index
    %11 = vector.load %arg6[%c0_11, %c0_12] : memref<1x64xf32, #tpu.memory_space<vmem>>, vector<1x64xf32>
    %cst_13 = arith.constant dense<0.000000e+00> : vector<256x64xf32>
    %12 = tpu.matmul %9, %10, %cst_13 {dimension_numbers = #tpu.dot_dimension_numbers<[1], [0], [0], [1], [0, 0, 1, 1], [], []>} : vector<256x64xf32>, vector<64x64xf32>, vector<256x64xf32> -> vector<256x64xf32>
    %cst_14 = arith.constant dense<0.000000e+00> : vector<256x64xf32>
    %13 = tpu.matmul %0, %12, %cst_14 {dimension_numbers = #tpu.dot_dimension_numbers<[1], [0], [0], [1], [0, 0, 1, 1], [], []>} : vector<256x256xf32>, vector<256x64xf32>, vector<256x64xf32> -> vector<256x64xf32>
    %14 = vector.broadcast %11 : vector<1x64xf32> to vector<256x64xf32>
    %15 = arith.addf %13, %14 : vector<256x64xf32>
    %cst_15 = arith.constant 0.000000e+00 : f32
    %16 = vector.broadcast %cst_15 : f32 to vector<256x64xf32>
    %17 = arith.maximumf %15, %16 : vector<256x64xf32>
    %c0_16 = arith.constant 0 : index
    %c0_17 = arith.constant 0 : index
    %18 = vector.load %arg7[%c0_16, %c0_17] : memref<64x16xf32, #tpu.memory_space<vmem>>, vector<64x16xf32>
    %c0_18 = arith.constant 0 : index
    %c0_19 = arith.constant 0 : index
    %19 = vector.load %arg8[%c0_18, %c0_19] : memref<1x16xf32, #tpu.memory_space<vmem>>, vector<1x16xf32>
    %cst_20 = arith.constant dense<0.000000e+00> : vector<256x16xf32>
    %20 = tpu.matmul %17, %18, %cst_20 {dimension_numbers = #tpu.dot_dimension_numbers<[1], [0], [0], [1], [0, 0, 1, 1], [], []>} : vector<256x64xf32>, vector<64x16xf32>, vector<256x16xf32> -> vector<256x16xf32>
    %cst_21 = arith.constant dense<0.000000e+00> : vector<256x16xf32>
    %21 = tpu.matmul %0, %20, %cst_21 {dimension_numbers = #tpu.dot_dimension_numbers<[1], [0], [0], [1], [0, 0, 1, 1], [], []>} : vector<256x256xf32>, vector<256x16xf32>, vector<256x16xf32> -> vector<256x16xf32>
    %22 = vector.broadcast %19 : vector<1x16xf32> to vector<256x16xf32>
    %23 = arith.addf %21, %22 : vector<256x16xf32>
    %c0_22 = arith.constant 0 : index
    %c0_23 = arith.constant 0 : index
    %24 = vector.load %arg9[%c0_22, %c0_23] : memref<256x16xf32, #tpu.memory_space<vmem>>, vector<256x16xf32>
    tpu.vector_store %arg9[%c0_22, %c0_23], %23 {strides = array<i32>} : memref<256x16xf32, #tpu.memory_space<vmem>>, vector<256x16xf32>,
    return
  }
  func.func @transform_0(%arg0: i32) -> (i32, i32) {
    %c0_i32 = arith.constant 0 : i32
    %c0_i32_0 = arith.constant 0 : i32
    %c0_i32_1 = arith.constant 0 : i32
    return %c0_i32, %c0_i32_0 : i32, i32
  }
  func.func @transform_1(%arg0: i32) -> (i32, i32) {
    %c0_i32 = arith.constant 0 : i32
    %c0_i32_0 = arith.constant 0 : i32
    %c0_i32_1 = arith.constant 0 : i32
    return %c0_i32, %c0_i32_0 : i32, i32
  }
  func.func @transform_2(%arg0: i32) -> (i32, i32) {
    %c0_i32 = arith.constant 0 : i32
    %c0_i32_0 = arith.constant 0 : i32
    %c0_i32_1 = arith.constant 0 : i32
    return %c0_i32, %c0_i32_0 : i32, i32
  }
  func.func @transform_3(%arg0: i32) -> (i32, i32) {
    %c0_i32 = arith.constant 0 : i32
    %c0_i32_0 = arith.constant 0 : i32
    %c0_i32_1 = arith.constant 0 : i32
    return %c0_i32, %c0_i32_0 : i32, i32
  }
  func.func @transform_4(%arg0: i32) -> (i32, i32) {
    %c0_i32 = arith.constant 0 : i32
    %c0_i32_0 = arith.constant 0 : i32
    %c0_i32_1 = arith.constant 0 : i32
    return %c0_i32, %c0_i32_0 : i32, i32
  }
  func.func @transform_5(%arg0: i32) -> (i32, i32) {
    %c0_i32 = arith.constant 0 : i32
    %c0_i32_0 = arith.constant 0 : i32
    %c0_i32_1 = arith.constant 0 : i32
    return %c0_i32, %c0_i32_0 : i32, i32
  }
  func.func @transform_6(%arg0: i32) -> (i32, i32) {
    %c0_i32 = arith.constant 0 : i32
    %c0_i32_0 = arith.constant 0 : i32
    %c0_i32_1 = arith.constant 0 : i32
    return %c0_i32, %c0_i32_0 : i32, i32
  }
  func.func @transform_7(%arg0: i32) -> (i32, i32) {
    %c0_i32 = arith.constant 0 : i32
    %c0_i32_0 = arith.constant 0 : i32
    %c0_i32_1 = arith.constant 0 : i32
    return %c0_i32, %c0_i32_0 : i32, i32
  }
  func.func @transform_8(%arg0: i32) -> (i32, i32) {
    %c0_i32 = arith.constant 0 : i32
    %c0_i32_0 = arith.constant 0 : i32
    %c0_i32_1 = arith.constant 0 : i32
    return %c0_i32, %c0_i32_0 : i32, i32
  }
}

</mosaic_0001>

<bundles_post_ra>
// kernel: tpu_custom_call.1
= control target key start
LH: loop header
LB: loop body
LE: loop exit
PB: predicated region body
PF: predicated region fallthrough
CT: control target
= control target key end

     0   :  { %13 = vsyncpa [#allocation3], 0  ;;  %s2475_s27 = smov [#allocation2]   ;;  %s3493_s0 = inlined_call_operand.hbm [shape: f32[256,256], index: 0, kind: input, shape index: {}]   ;;  %s3494_s1 = inlined_call_operand.vmem [shape: f32[256,32], index: 1, kind: input, shape index: {}]   ;;  %s3495_s2 = inlined_call_operand.vmem [shape: f32[32,64], index: 2, kind: input, shape index: {}]   ;;  %s3496_s3 = inlined_call_operand.vmem [shape: f32[1,64], index: 3, kind: input, shape index: {}]   ;;  %s3497_s4 = inlined_call_operand.vmem [shape: f32[64,64], index: 4, kind: input, shape index: {}]   ;;  %s3498_s5 = inlined_call_operand.vmem [shape: f32[1,64], index: 5, kind: input, shape index: {}]   ;;  %s3499_s6 = inlined_call_operand.vmem [shape: f32[64,16], index: 6, kind: input, shape index: {}]   ;;  %s3500_s7 = inlined_call_operand.vmem [shape: f32[1,16], index: 7, kind: input, shape index: {}]   ;;  %s3501_s8 = inlined_call_operand.vmem [shape: f32[256,16], index: 8, kind: output, shape index: {}]  }
   0x1   :  { %s19_s28 = sshll.u32 %s2475_s27, 4  ;;  %s20_s28 = int_to_ptr.vmem [resolvable:$true] %s19_s28 }
   0x2   :  { %s2461_s29 = scalar_lea.vmem %s20_s28, 8192  ;;  %p2466_p1 = scmp.lt.s32.totalorder %s20_s28, %s20_s28 }
   0x3   :  { %p2462_p0 = scmp.ne.s32.totalorder %s20_s28, %s2461_s29  ;;  %p2467_p2 = scmp.lt.s32.totalorder %s2461_s29, %s2461_s29 }
   0x5   :  { %p2468_p3 = por %p2467_p2, %p2466_p1 }
   0x7   :  { %p2469_p4 = pnand %p2468_p3, %p2462_p0 }
   0x9   :  { %2472 = shalt.err (!%p2469_p4)
}
   0xa   :  { %s2476_s30 = smov 256   ;;  %s2477_s9 = smov 16  }
   0xb   :  { %25 = dma.hbm_to_vmem [thread:$0]  %s3493_s0, 8192, %s20_s28, [#allocation3], %s2476_s30, %s2476_s30, %s2477_s9  }
   0xc   :  { %2473 = dma.done.wait [#allocation3], 8192  }
   0xd   :  { %2474 = vsyncadd [#allocation3], 4294959104  ;;  %vm144_vm0 = vcmask 261120   ;;  %v142_v0 = vld [vmem:[%s3495_s2 + $0x18] sm:$0xff]  ;;  %v141_v1 = vld [vmem:[%s3495_s2 + $0x10] sm:$0xff]  ;;  %v3502_v36 = vmov 0.0  }
   0xe   :  { %2137 = vmatprep.subr.mxu0 %v142_v0  ;;  %v107_v2 = vld [vmem:[%s3494_s1] sm:$0xff]  ;;  %v140_v3 = vld [vmem:[%s3495_s2 + $0x8] sm:$0xff]  ;;  %v109_v6 = vld [vmem:[%s3494_s1 + $0x10] sm:$0xff]  ;;  %2321 = vmatprep.subr.mxu1 %v3502_v36  ;;  %vm738_vm1 = vcmask 523264   ;;  %vm1884_vm2 = vcmask 130048  }
   0xf   :  { %2138 = vmatpush3.msra.mxu0 %v142_v0  ;;  %2145 = vmatprep.mubr.msk.f32.mxu0 %vm144_vm0, %v107_v2  ;;  %v139_v4 = vld [vmem:[%s3495_s2] sm:$0xff]  ;;  %v108_v5 = vld [vmem:[%s3494_s1 + $0x8] sm:$0xff]  ;;  %v110_v7 = vld [vmem:[%s3494_s1 + $0x18] sm:$0xff] }
  0x10   :  { %2139 = vmatprep.subr.mxu0 %v141_v1  ;;  %v111_v8 = vld [vmem:[%s3494_s1 + $0x20] sm:$0xff]  ;;  %v112_v9 = vld [vmem:[%s3494_s1 + $0x28] sm:$0xff]  ;;  %v113_v10 = vld [vmem:[%s3494_s1 + $0x30] sm:$0xff] }
  0x11   :  { %2140 = vmatpush3.msra.mxu0 %v141_v1  ;;  %v114_v11 = vld [vmem:[%s3494_s1 + $0x38] sm:$0xff]  ;;  %v115_v12 = vld [vmem:[%s3494_s1 + $0x40] sm:$0xff]  ;;  %v116_v13 = vld [vmem:[%s3494_s1 + $0x48] sm:$0xff] }
  0x12   :  { %2141 = vmatprep.subr.mxu0 %v140_v3  ;;  %v117_v14 = vld [vmem:[%s3494_s1 + $0x50] sm:$0xff]  ;;  %v118_v15 = vld [vmem:[%s3494_s1 + $0x58] sm:$0xff]  ;;  %v119_v16 = vld [vmem:[%s3494_s1 + $0x60] sm:$0xff] }
  0x13   :  { %2142 = vmatpush3.msra.mxu0 %v140_v3  ;;  %v120_v17 = vld [vmem:[%s3494_s1 + $0x68] sm:$0xff]  ;;  %v121_v18 = vld [vmem:[%s3494_s1 + $0x70] sm:$0xff]  ;;  %v122_v19 = vld [vmem:[%s3494_s1 + $0x78] sm:$0xff] }
  0x14   :  { %2143 = vmatprep.subr.mxu0 %v139_v4  ;;  %v123_v20 = vld [vmem:[%s3494_s1 + $0x80] sm:$0xff]  ;;  %v124_v21 = vld [vmem:[%s3494_s1 + $0x88] sm:$0xff]  ;;  %v125_v22 = vld [vmem:[%s3494_s1 + $0x90] sm:$0xff] }
  0x15   :  { %2144 = vmatpush3.msra.mxu0 %v139_v4  ;;  %v126_v23 = vld [vmem:[%s3494_s1 + $0x98] sm:$0xff]  ;;  %v127_v24 = vld [vmem:[%s3494_s1 + $0xa0] sm:$0xff]  ;;  %v128_v25 = vld [vmem:[%s3494_s1 + $0xa8] sm:$0xff] }
  0x16   :  { %2146 = vmatmul.mubr.msk.f32.vlgmr.msra.gmra.mxu0 %vm144_vm0, %v108_v5  ;;  %v129_v26 = vld [vmem:[%s3494_s1 + $0xb0] sm:$0xff]  ;;  %v130_v27 = vld [vmem:[%s3494_s1 + $0xb8] sm:$0xff]  ;;  %v131_v28 = vld [vmem:[%s3494_s1 + $0xc0] sm:$0xff]  ;;  %472 = vmatprep.subr.mxu0 %v3502_v36 }
  0x17   :  { %2148 = vmatprep.mubr.msk.f32.mxu0 %vm144_vm0, %v109_v6  ;;  %v132_v29 = vld [vmem:[%s3494_s1 + $0xc8] sm:$0xff]  ;;  %v133_v30 = vld [vmem:[%s3494_s1 + $0xd0] sm:$0xff]  ;;  %v134_v31 = vld [vmem:[%s3494_s1 + $0xd8] sm:$0xff] }
  0x18   :  { %v135_v32 = vld [vmem:[%s3494_s1 + $0xe0] sm:$0xff]  ;;  %v136_v33 = vld [vmem:[%s3494_s1 + $0xe8] sm:$0xff]  ;;  %v137_v34 = vld [vmem:[%s3494_s1 + $0xf0] sm:$0xff] }
  0x19   :  { %v138_v35 = vld [vmem:[%s3494_s1 + $0xf8] sm:$0xff]  ;;  %v2669_v37 = vld [vmem:[#allocation2 + $0x8] sm:$0xff] }
  0x1a   :  { %2149 = vmatmul.mubr.msk.f32.gmra.mxu0 %vm144_vm0, %v110_v7  ;;  %v74_v38 = vld [vmem:[#allocation2 + $0xf8] sm:$0xff]  ;;  %v2782_v7 = vld [vmem:[#allocation2] sm:$0xff] }
  0x1b   :  { %2151 = vmatprep.mubr.msk.f32.mxu0 %vm144_vm0, %v111_v8  ;;  %611 = vmatprep.mubr.f32.mxu1 %v74_v38  ;;  %v2784_v8 = vld [vmem:[#allocation2 + $0xf0] sm:$0xff] }
  0x1c   :  { %v2872_v38 = vld [vmem:[#allocation2 + $0x150] sm:$0xff] }
  0x1d   :  { %3541 = vst [vmem:[#allocation13_spill] sm:$0xff] %v2872_v38 }
  0x1e   :  { %2152 = vmatmul.mubr.msk.f32.gmra.mxu0 %vm144_vm0, %v112_v9  ;;  %v2788_v9 = vld [vmem:[#allocation2 + $0x18] sm:$0xff] }
  0x1f   :  { %2154 = vmatprep.mubr.msk.f32.mxu0 %vm144_vm0, %v113_v10  ;;  %v2790_v10 = vld [vmem:[#allocation2 + $0x108] sm:$0xff] }
  0x22   :  { %2155 = vmatmul.mubr.msk.f32.gmra.mxu0 %vm144_vm0, %v114_v11  ;;  %v736_v11 = vld [vmem:[%s3497_s4 + $0x38] sm:$0xff] }
  0x23   :  { %2157 = vmatprep.mubr.msk.f32.mxu0 %vm144_vm0, %v115_v12  ;;  %v2800_v12 = vld [vmem:[#allocation2 + $0x10] sm:$0xff] }
  0x26   :  { %2158 = vmatmul.mubr.msk.f32.gmra.mxu0 %vm144_vm0, %v116_v13  ;;  %v2803_v13 = vld [vmem:[#allocation2 + $0x100] sm:$0xff] }
  0x27   :  { %2160 = vmatprep.mubr.msk.f32.mxu0 %vm144_vm0, %v117_v14  ;;  %v2805_v14 = vld [vmem:[#allocation2 + $0x28] sm:$0xff] }
  0x2a   :  { %2161 = vmatmul.mubr.msk.f32.gmra.mxu0 %vm144_vm0, %v118_v15  ;;  %v2807_v15 = vld [vmem:[#allocation2 + $0x118] sm:$0xff] }
  0x2b   :  { %2163 = vmatprep.mubr.msk.f32.mxu0 %vm144_vm0, %v119_v16  ;;  %v735_v16 = vld [vmem:[%s3497_s4 + $0x30] sm:$0xff] }
  0x2e   :  { %2164 = vmatmul.mubr.msk.f32.gmra.mxu0 %vm144_vm0, %v120_v17  ;;  %v2815_v17 = vld [vmem:[#allocation2 + $0x20] sm:$0xff] }
  0x2f   :  { %2166 = vmatprep.mubr.msk.f32.mxu0 %vm144_vm0, %v121_v18  ;;  %v2818_v18 = vld [vmem:[#allocation2 + $0x110] sm:$0xff] }
  0x30   :  { %3533 = vst [vmem:[#allocation5_spill] sm:$0xff] %v2818_v18 }
  0x32   :  { %2167 = vmatmul.mubr.msk.f32.gmra.mxu0 %vm144_vm0, %v122_v19  ;;  %v2820_v19 = vld [vmem:[#allocation2 + $0x38] sm:$0xff] }
  0x33   :  { %2169 = vmatprep.mubr.msk.f32.mxu0 %vm144_vm0, %v123_v20  ;;  %v2822_v20 = vld [vmem:[#allocation2 + $0x128] sm:$0xff] }
  0x34   :  { %3534 = vst [vmem:[#allocation6_spill] sm:$0xff] %v2822_v20 }
  0x36   :  { %2170 = vmatmul.mubr.msk.f32.gmra.mxu0 %vm144_vm0, %v124_v21  ;;  %v734_v21 = vld [vmem:[%s3497_s4 + $0x28] sm:$0xff] }
  0x37   :  { %2172 = vmatprep.mubr.msk.f32.mxu0 %vm144_vm0, %v125_v22  ;;  %v2830_v22 = vld [vmem:[#allocation2 + $0x30] sm:$0xff] }
  0x3a   :  { %2173 = vmatmul.mubr.msk.f32.gmra.mxu0 %vm144_vm0, %v126_v23  ;;  %v2833_v23 = vld [vmem:[#allocation2 + $0x120] sm:$0xff] }
  0x3b   :  { %2175 = vmatprep.mubr.msk.f32.mxu0 %vm144_vm0, %v127_v24  ;;  %3535 = vst [vmem:[#allocation7_spill] sm:$0xff] %v2833_v23  ;;  %v2835_v24 = vld [vmem:[#allocation2 + $0x48] sm:$0xff] }
  0x3e   :  { %2176 = vmatmul.mubr.msk.f32.gmra.mxu0 %vm144_vm0, %v128_v25  ;;  %v2837_v25 = vld [vmem:[#allocation2 + $0x138] sm:$0xff] }
  0x3f   :  { %2178 = vmatprep.mubr.msk.f32.mxu0 %vm144_vm0, %v129_v26  ;;  %3536 = vst [vmem:[#allocation8_spill] sm:$0xff] %v2837_v25  ;;  %v733_v26 = vld [vmem:[%s3497_s4 + $0x20] sm:$0xff] }
  0x42   :  { %2179 = vmatmul.mubr.msk.f32.gmra.mxu0 %vm144_vm0, %v130_v27  ;;  %v2845_v27 = vld [vmem:[#allocation2 + $0x40] sm:$0xff] }
  0x43   :  { %2181 = vmatprep.mubr.msk.f32.mxu0 %vm144_vm0, %v131_v28  ;;  %v2848_v28 = vld [vmem:[#allocation2 + $0x130] sm:$0xff] }
  0x44   :  { %3537 = vst [vmem:[#allocation9_spill] sm:$0xff] %v2848_v28 }
  0x46   :  { %2182 = vmatmul.mubr.msk.f32.gmra.mxu0 %vm144_vm0, %v132_v29  ;;  %v2850_v29 = vld [vmem:[#allocation2 + $0x58] sm:$0xff] }
  0x47   :  { %2184 = vmatprep.mubr.msk.f32.mxu0 %vm144_vm0, %v133_v30  ;;  %v2852_v30 = vld [vmem:[#allocation2 + $0x148] sm:$0xff] }
  0x48   :  { %3538 = vst [vmem:[#allocation10_spill] sm:$0xff] %v2852_v30 }
  0x4a   :  { %2185 = vmatmul.mubr.msk.f32.gmra.mxu0 %vm144_vm0, %v134_v31  ;;  %v2857_v31 = vld [vmem:[#allocation2 + $0x50] sm:$0xff] }
  0x4b   :  { %2187 = vmatprep.mubr.msk.f32.mxu0 %vm144_vm0, %v135_v32  ;;  %v2860_v32 = vld [vmem:[#allocation2 + $0x140] sm:$0xff] }
  0x4c   :  { %3539 = vst [vmem:[#allocation11_spill] sm:$0xff] %v2860_v32 }
  0x4e   :  { %2188 = vmatmul.mubr.msk.f32.gmra.mxu0 %vm144_vm0, %v136_v33  ;;  %v2862_v33 = vld [vmem:[#allocation2 + $0x68] sm:$0xff] }
  0x4f   :  { %2190 = vmatprep.mubr.msk.f32.mxu0 %vm144_vm0, %v137_v34  ;;  %v2864_v34 = vld [vmem:[#allocation2 + $0x158] sm:$0xff] }
  0x50   :  { %3540 = vst [vmem:[#allocation12_spill] sm:$0xff] %v2864_v34 }
  0x52   :  { %2191 = vmatmul.mubr.msk.f32.gmra.mxu0 %vm144_vm0, %v138_v35  ;;  %v2869_v35 = vld [vmem:[#allocation2 + $0x60] sm:$0xff] }
  0x53   :  { %536 = vmatprep.mubr.f32.mxu0 %v2669_v37 }
  0xd6   :  { %v2672_v39 = vpop.f32.mrf.mxu0 }
  0xd8   :  { %v2674_v40 = vpop.f32.mrf.mxu0 }
  0xda   :  { %v2676_v41 = vpop.f32.mrf.mxu0 }
  0xdc   :  { %v2678_v42 = vpop.f32.mrf.mxu0 }
  0xde   :  { %v2153_v43 = vpop.f32.mrf.mxu0 }
  0xe0   :  { %v2680_v44 = vpop.f32.mrf.mxu0 }
  0xe2   :  { %v2156_v45 = vpop.f32.mrf.mxu0 }
  0xe4   :  { %v337_v46 = vpop.f32.mrf.mxu0 }
  0xe6   :  { %v2159_v47 = vpop.f32.mrf.mxu0 }
  0xe8   :  { %v347_v48 = vpop.f32.mrf.mxu0 }
  0xea   :  { %v2162_v49 = vpop.f32.mrf.mxu0 }
  0xec   :  { %v357_v50 = vpop.f32.mrf.mxu0 }
  0xee   :  { %v2165_v51 = vpop.f32.mrf.mxu0 }
  0xf0   :  { %v367_v52 = vpop.f32.mrf.mxu0 }
  0xf2   :  { %v2168_v53 = vpop.f32.mrf.mxu0 }
  0xf3   :  { %473 = vmatpush1.msra.mxu0 %v2168_v53  ;;  %2353 = vmatpush1.msra.mxu1 %v2168_v53  ;;  %v2917_v53 = vld [vmem:[#allocation2 + $0xa0] sm:$0xff] }
  0xf4   :  { %v377_v54 = vpop.f32.mrf.mxu0  ;;  %474 = vmatprep.subr.mxu0 %v3502_v36  ;;  %2322 = vmatprep.subr.mxu1 %v3502_v36 }
  0xf5   :  { %475 = vmatpush1.msra.mxu0 %v377_v54  ;;  %2354 = vmatpush1.msra.mxu1 %v377_v54  ;;  %v2920_v54 = vld [vmem:[#allocation2 + $0x190] sm:$0xff] }
  0xf6   :  { %v2684_v55 = vpop.f32.mrf.mxu0  ;;  %476 = vmatprep.subr.mxu0 %v3502_v36  ;;  %2323 = vmatprep.subr.mxu1 %v3502_v36  ;;  %3549 = vst [vmem:[#allocation21_spill] sm:$0xff] %v2920_v54 }
  0xf7   :  { %477 = vmatpush1.msra.mxu0 %v2165_v51  ;;  %2355 = vmatpush1.msra.mxu1 %v2165_v51  ;;  %v2910_v51 = vld [vmem:[#allocation2 + $0xa8] sm:$0xff] }
  0xf8   :  { %v2688_v56 = vpop.f32.mrf.mxu0  ;;  %478 = vmatprep.subr.mxu0 %v3502_v36  ;;  %2324 = vmatprep.subr.mxu1 %v3502_v36 }
  0xf9   :  { %479 = vmatpush1.msra.mxu0 %v367_v52  ;;  %2356 = vmatpush1.msra.mxu1 %v367_v52  ;;  %v2912_v52 = vld [vmem:[#allocation2 + $0x198] sm:$0xff] }
  0xfa   :  { %v2692_v57 = vpop.f32.mrf.mxu0  ;;  %480 = vmatprep.subr.mxu0 %v3502_v36  ;;  %2325 = vmatprep.subr.mxu1 %v3502_v36  ;;  %3548 = vst [vmem:[#allocation20_spill] sm:$0xff] %v2912_v52 }
  0xfb   :  { %481 = vmatpush1.msra.mxu0 %v2162_v49  ;;  %2357 = vmatpush1.msra.mxu1 %v2162_v49  ;;  %v2905_v49 = vld [vmem:[#allocation2 + $0x90] sm:$0xff] }
  0xfc   :  { %v2696_v58 = vpop.f32.mrf.mxu0  ;;  %482 = vmatprep.subr.mxu0 %v3502_v36  ;;  %2326 = vmatprep.subr.mxu1 %v3502_v36 }
  0xfd   :  { %483 = vmatpush1.msra.mxu0 %v357_v50  ;;  %2358 = vmatpush1.msra.mxu1 %v357_v50  ;;  %v2908_v50 = vld [vmem:[#allocation2 + $0x180] sm:$0xff] }
  0xfe   :  { %v2700_v59 = vpop.f32.mrf.mxu0  ;;  %484 = vmatprep.subr.mxu0 %v3502_v36  ;;  %2327 = vmatprep.subr.mxu1 %v3502_v36  ;;  %3547 = vst [vmem:[#allocation19_spill] sm:$0xff] %v2908_v50 }
  0xff   :  { %485 = vmatpush1.msra.mxu0 %v2159_v47  ;;  %2359 = vmatpush1.msra.mxu1 %v2159_v47  ;;  %v2898_v47 = vld [vmem:[#allocation2 + $0x98] sm:$0xff] }
 0x100   :  { %v2704_v60 = vpop.f32.mrf.mxu0  ;;  %486 = vmatprep.subr.mxu0 %v3502_v36  ;;  %2328 = vmatprep.subr.mxu1 %v3502_v36 }
 0x101   :  { %487 = vmatpush1.msra.mxu0 %v347_v48  ;;  %2360 = vmatpush1.msra.mxu1 %v347_v48  ;;  %v2900_v48 = vld [vmem:[#allocation2 + $0x188] sm:$0xff] }
 0x102   :  { %v2708_v61 = vpop.f32.mrf.mxu0  ;;  %488 = vmatprep.subr.mxu0 %v3502_v36  ;;  %2329 = vmatprep.subr.mxu1 %v3502_v36  ;;  %3546 = vst [vmem:[#allocation18_spill] sm:$0xff] %v2900_v48 }
 0x103   :  { %489 = vmatpush1.msra.mxu0 %v2156_v45  ;;  %2361 = vmatpush1.msra.mxu1 %v2156_v45  ;;  %v2893_v45 = vld [vmem:[#allocation2 + $0x80] sm:$0xff] }
 0x104   :  { %v2712_v62 = vpop.f32.mrf.mxu0  ;;  %490 = vmatprep.subr.mxu0 %v3502_v36  ;;  %2330 = vmatprep.subr.mxu1 %v3502_v36 }
 0x105   :  { %491 = vmatpush1.msra.mxu0 %v337_v46  ;;  %2362 = vmatpush1.msra.mxu1 %v337_v46  ;;  %v2896_v46 = vld [vmem:[#allocation2 + $0x170] sm:$0xff] }
 0x106   :  { %v2183_v63 = vpop.f32.mrf.mxu0  ;;  %492 = vmatprep.subr.mxu0 %v3502_v36  ;;  %2331 = vmatprep.subr.mxu1 %v3502_v36  ;;  %3545 = vst [vmem:[#allocation17_spill] sm:$0xff] %v2896_v46 }
 0x107   :  { %493 = vmatpush1.msra.mxu0 %v2153_v43  ;;  %2363 = vmatpush1.msra.mxu1 %v2153_v43  ;;  %v2886_v43 = vld [vmem:[#allocation2 + $0x88] sm:$0xff] }
 0x108   :  { %v427_v0 = vpop.f32.mrf.mxu0  ;;  %494 = vmatprep.subr.mxu0 %v3502_v36  ;;  %2332 = vmatprep.subr.mxu1 %v3502_v36 }
 0x109   :  { %495 = vmatpush1.msra.mxu0 %v2680_v44  ;;  %2364 = vmatpush1.msra.mxu1 %v2680_v44  ;;  %v2888_v44 = vld [vmem:[#allocation2 + $0x178] sm:$0xff] }
 0x10a   :  { %v2186_v1 = vpop.f32.mrf.mxu0  ;;  %496 = vmatprep.subr.mxu0 %v3502_v36  ;;  %2333 = vmatprep.subr.mxu1 %v3502_v36  ;;  %3544 = vst [vmem:[#allocation16_spill] sm:$0xff] %v2888_v44 }
 0x10b   :  { %497 = vmatpush1.msra.mxu0 %v2676_v41  ;;  %2365 = vmatpush1.msra.mxu1 %v2676_v41  ;;  %v2881_v41 = vld [vmem:[#allocation2 + $0x70] sm:$0xff] }
 0x10c   :  { %v437_v2 = vpop.f32.mrf.mxu0  ;;  %498 = vmatprep.subr.mxu0 %v3502_v36  ;;  %2334 = vmatprep.subr.mxu1 %v3502_v36 }
 0x10d   :  { %499 = vmatpush1.msra.mxu0 %v2678_v42  ;;  %2366 = vmatpush1.msra.mxu1 %v2678_v42  ;;  %v2884_v42 = vld [vmem:[#allocation2 + $0x160] sm:$0xff] }
 0x10e   :  { %v2189_v3 = vpop.f32.mrf.mxu0  ;;  %500 = vmatprep.subr.mxu0 %v3502_v36  ;;  %2335 = vmatprep.subr.mxu1 %v3502_v36  ;;  %3543 = vst [vmem:[#allocation15_spill] sm:$0xff] %v2884_v42 }
 0x10f   :  { %501 = vmatpush1.msra.mxu0 %v2672_v39  ;;  %2367 = vmatpush1.msra.mxu1 %v2672_v39  ;;  %v2874_v39 = vld [vmem:[#allocation2 + $0x78] sm:$0xff] }
 0x110   :  { %v447_v4 = vpop.f32.mrf.mxu0  ;;  %502 = vmatprep.subr.mxu0 %v3502_v36  ;;  %2336 = vmatprep.subr.mxu1 %v3502_v36 }
 0x111   :  { %503 = vmatpush1.msra.mxu0 %v2674_v40  ;;  %2368 = vmatpush1.msra.mxu1 %v2674_v40  ;;  %v2876_v40 = vld [vmem:[#allocation2 + $0x168] sm:$0xff] }
 0x112   :  { %v2192_v5 = vpop.f32.mrf.mxu0  ;;  %504 = vmatprep.subr.mxu0 %v3502_v36  ;;  %2337 = vmatprep.subr.mxu1 %v3502_v36  ;;  %3542 = vst [vmem:[#allocation14_spill] sm:$0xff] %v2876_v40 }
 0x113   :  { %505 = vmatpush2.msra.mxu0 %v2192_v5  ;;  %2369 = vmatpush2.msra.mxu1 %v2192_v5  ;;  %v2965_v5 = vld [vmem:[#allocation2 + $0xe0] sm:$0xff] }
 0x114   :  { %v457_v6 = vpop.f32.mrf.mxu0  ;;  %506 = vmatprep.subr.mxu0 %v3502_v36  ;;  %2338 = vmatprep.subr.mxu1 %v3502_v36 }
 0x115   :  { %507 = vmatpush2.msra.mxu0 %v457_v6  ;;  %2370 = vmatpush2.msra.mxu1 %v457_v6  ;;  %v2968_v6 = vld [vmem:[#allocation2 + $0x1d0] sm:$0xff] }
 0x116   :  { %508 = vmatprep.subr.mxu0 %v3502_v36  ;;  %2339 = vmatprep.subr.mxu1 %v3502_v36  ;;  %3557 = vst [vmem:[#allocation29_spill] sm:$0xff] %v2968_v6 }
 0x117   :  { %509 = vmatpush2.msra.mxu0 %v2189_v3  ;;  %2371 = vmatpush2.msra.mxu1 %v2189_v3  ;;  %v2958_v3 = vld [vmem:[#allocation2 + $0xe8] sm:$0xff] }
 0x118   :  { %510 = vmatprep.subr.mxu0 %v3502_v36  ;;  %2340 = vmatprep.subr.mxu1 %v3502_v36 }
 0x119   :  { %511 = vmatpush2.msra.mxu0 %v447_v4  ;;  %2372 = vmatpush2.msra.mxu1 %v447_v4  ;;  %v2960_v4 = vld [vmem:[#allocation2 + $0x1d8] sm:$0xff] }
 0x11a   :  { %512 = vmatprep.subr.mxu0 %v3502_v36  ;;  %2341 = vmatprep.subr.mxu1 %v3502_v36  ;;  %3556 = vst [vmem:[#allocation28_spill] sm:$0xff] %v2960_v4 }
 0x11b   :  { %513 = vmatpush2.msra.mxu0 %v2186_v1  ;;  %2373 = vmatpush2.msra.mxu1 %v2186_v1  ;;  %v2953_v1 = vld [vmem:[#allocation2 + $0xd0] sm:$0xff] }
 0x11c   :  { %514 = vmatprep.subr.mxu0 %v3502_v36  ;;  %2342 = vmatprep.subr.mxu1 %v3502_v36 }
 0x11d   :  { %515 = vmatpush2.msra.mxu0 %v437_v2  ;;  %2374 = vmatpush2.msra.mxu1 %v437_v2  ;;  %v2956_v2 = vld [vmem:[#allocation2 + $0x1c0] sm:$0xff] }
 0x11e   :  { %516 = vmatprep.subr.mxu0 %v3502_v36  ;;  %2343 = vmatprep.subr.mxu1 %v3502_v36  ;;  %3555 = vst [vmem:[#allocation27_spill] sm:$0xff] %v2956_v2 }
 0x11f   :  { %517 = vmatpush2.msra.mxu0 %v2183_v63  ;;  %2375 = vmatpush2.msra.mxu1 %v2183_v63  ;;  %v2946_v63 = vld [vmem:[#allocation2 + $0xd8] sm:$0xff] }
 0x120   :  { %518 = vmatprep.subr.mxu0 %v3502_v36  ;;  %2344 = vmatprep.subr.mxu1 %v3502_v36 }
 0x121   :  { %519 = vmatpush2.msra.mxu0 %v427_v0  ;;  %2376 = vmatpush2.msra.mxu1 %v427_v0  ;;  %v2948_v0 = vld [vmem:[#allocation2 + $0x1c8] sm:$0xff] }
 0x122   :  { %520 = vmatprep.subr.mxu0 %v3502_v36  ;;  %2345 = vmatprep.subr.mxu1 %v3502_v36  ;;  %3554 = vst [vmem:[#allocation26_spill] sm:$0xff] %v2948_v0 }
 0x123   :  { %521 = vmatpush2.msra.mxu0 %v2708_v61  ;;  %2377 = vmatpush2.msra.mxu1 %v2708_v61  ;;  %v2941_v61 = vld [vmem:[#allocation2 + $0xc0] sm:$0xff] }
 0x124   :  { %522 = vmatprep.subr.mxu0 %v3502_v36  ;;  %2346 = vmatprep.subr.mxu1 %v3502_v36 }
 0x125   :  { %523 = vmatpush2.msra.mxu0 %v2712_v62  ;;  %2378 = vmatpush2.msra.mxu1 %v2712_v62  ;;  %v2944_v62 = vld [vmem:[#allocation2 + $0x1b0] sm:$0xff] }
 0x126   :  { %524 = vmatprep.subr.mxu0 %v3502_v36  ;;  %2347 = vmatprep.subr.mxu1 %v3502_v36  ;;  %3553 = vst [vmem:[#allocation25_spill] sm:$0xff] %v2944_v62 }
 0x127   :  { %525 = vmatpush2.msra.mxu0 %v2700_v59  ;;  %2379 = vmatpush2.msra.mxu1 %v2700_v59  ;;  %v2934_v59 = vld [vmem:[#allocation2 + $0xc8] sm:$0xff] }
 0x128   :  { %526 = vmatprep.subr.mxu0 %v3502_v36  ;;  %2348 = vmatprep.subr.mxu1 %v3502_v36 }
 0x129   :  { %527 = vmatpush2.msra.mxu0 %v2704_v60  ;;  %2380 = vmatpush2.msra.mxu1 %v2704_v60  ;;  %v2936_v60 = vld [vmem:[#allocation2 + $0x1b8] sm:$0xff] }
 0x12a   :  { %528 = vmatprep.subr.mxu0 %v3502_v36  ;;  %2349 = vmatprep.subr.mxu1 %v3502_v36  ;;  %3552 = vst [vmem:[#allocation24_spill] sm:$0xff] %v2936_v60 }
 0x12b   :  { %529 = vmatpush2.msra.mxu0 %v2692_v57  ;;  %2381 = vmatpush2.msra.mxu1 %v2692_v57  ;;  %v2929_v57 = vld [vmem:[#allocation2 + $0xb0] sm:$0xff] }
 0x12c   :  { %530 = vmatprep.subr.mxu0 %v3502_v36  ;;  %2350 = vmatprep.subr.mxu1 %v3502_v36 }
 0x12d   :  { %531 = vmatpush2.msra.mxu0 %v2696_v58  ;;  %2382 = vmatpush2.msra.mxu1 %v2696_v58  ;;  %v2932_v58 = vld [vmem:[#allocation2 + $0x1a0] sm:$0xff] }
 0x12e   :  { %532 = vmatprep.subr.mxu0 %v3502_v36  ;;  %2351 = vmatprep.subr.mxu1 %v3502_v36  ;;  %3551 = vst [vmem:[#allocation23_spill] sm:$0xff] %v2932_v58 }
 0x12f   :  { %533 = vmatpush2.msra.mxu0 %v2684_v55  ;;  %2383 = vmatpush2.msra.mxu1 %v2684_v55  ;;  %v2922_v55 = vld [vmem:[#allocation2 + $0xb8] sm:$0xff] }
 0x130   :  { %534 = vmatprep.subr.mxu0 %v3502_v36  ;;  %2352 = vmatprep.subr.mxu1 %v3502_v36  ;;  %v732_v36 = vld [vmem:[%s3497_s4 + $0x18] sm:$0xff] }
 0x131   :  { %535 = vmatpush2.msra.mxu0 %v2688_v56  ;;  %2384 = vmatpush2.msra.mxu1 %v2688_v56  ;;  %v2924_v56 = vld [vmem:[#allocation2 + $0x1a8] sm:$0xff] }
 0x132   :  { %537 = vmatmul.mubr.f32.vlgmr.msra.gmra.mxu0 %v2782_v7  ;;  %612 = vmatmul.mubr.f32.vlgmr.msra.gmra.mxu1 %v2784_v8  ;;  %3550 = vst [vmem:[#allocation22_spill] sm:$0xff] %v2924_v56 }
 0x133   :  { %541 = vmatprep.mubr.f32.mxu0 %v2788_v9  ;;  %616 = vmatprep.mubr.f32.mxu1 %v2790_v10 }
 0x134   :  { %2193 = vmatprep.subr.mxu0 %v736_v11 }
 0x135   :  { %2194 = vmatpush3.msra.mxu0 %v736_v11  ;;  %v2970_v11 = vld [vmem:[#allocation2 + $0x1e8] sm:$0xff] }
 0x136   :  { %542 = vmatmul.mubr.f32.gmra.mxu0 %v2800_v12  ;;  %617 = vmatmul.mubr.f32.gmra.mxu1 %v2803_v13  ;;  %3558 = vst [vmem:[#allocation30_spill] sm:$0xff] %v2970_v11 }
 0x137   :  { %546 = vmatprep.mubr.f32.mxu0 %v2805_v14  ;;  %621 = vmatprep.mubr.f32.mxu1 %v2807_v15 }
 0x138   :  { %2195 = vmatprep.subr.mxu0 %v735_v16 }
 0x139   :  { %2196 = vmatpush3.msra.mxu0 %v735_v16  ;;  %v2975_v16 = vld [vmem:[#allocation2 + $0x1e0] sm:$0xff] }
 0x13a   :  { %547 = vmatmul.mubr.f32.gmra.mxu0 %v2815_v17  ;;  %622 = vmatmul.mubr.f32.gmra.mxu1 %v2818_v18  ;;  %3559 = vst [vmem:[#allocation31_spill] sm:$0xff] %v2975_v16 }
 0x13b   :  { %551 = vmatprep.mubr.f32.mxu0 %v2820_v19  ;;  %626 = vmatprep.mubr.f32.mxu1 %v2822_v20 }
 0x13c   :  { %2197 = vmatprep.subr.mxu0 %v734_v21 }
 0x13d   :  { %2198 = vmatpush3.msra.mxu0 %v734_v21  ;;  %v2977_v21 = vld [vmem:[#allocation2 + $0x1f8] sm:$0xff] }
 0x13e   :  { %552 = vmatmul.mubr.f32.gmra.mxu0 %v2830_v22  ;;  %627 = vmatmul.mubr.f32.gmra.mxu1 %v2833_v23  ;;  %3560 = vst [vmem:[#allocation32_spill] sm:$0xff] %v2977_v21 }
 0x13f   :  { %556 = vmatprep.mubr.f32.mxu0 %v2835_v24  ;;  %631 = vmatprep.mubr.f32.mxu1 %v2837_v25 }
 0x140   :  { %2199 = vmatprep.subr.mxu0 %v733_v26 }
 0x141   :  { %2200 = vmatpush3.msra.mxu0 %v733_v26  ;;  %v2981_v26 = vld [vmem:[#allocation2 + $0x1f0] sm:$0xff] }
 0x142   :  { %557 = vmatmul.mubr.f32.gmra.mxu0 %v2845_v27  ;;  %632 = vmatmul.mubr.f32.gmra.mxu1 %v2848_v28  ;;  %3561 = vst [vmem:[#allocation33_spill] sm:$0xff] %v2981_v26 }
 0x143   :  { %561 = vmatprep.mubr.f32.mxu0 %v2850_v29  ;;  %636 = vmatprep.mubr.f32.mxu1 %v2852_v30 }
 0x144   :  { %2201 = vmatprep.subr.mxu0 %v732_v36 }
 0x145   :  { %2202 = vmatpush3.msra.mxu0 %v732_v36  ;;  %v3000_v36 = vld [vmem:[%s3496_s3] ss:$0 sm:$0xff] }
 0x146   :  { %562 = vmatmul.mubr.f32.gmra.mxu0 %v2857_v31  ;;  %637 = vmatmul.mubr.f32.gmra.mxu1 %v2860_v32 }
 0x147   :  { %566 = vmatprep.mubr.f32.mxu0 %v2862_v33  ;;  %641 = vmatprep.mubr.f32.mxu1 %v2864_v34 }
 0x14a   :  { %567 = vmatmul.mubr.f32.gmra.mxu0 %v2869_v35  ;;  %642 = vmatmul.mubr.f32.gmra.mxu1 %v2872_v38 }
 0x14b   :  { %571 = vmatprep.mubr.f32.mxu0 %v2874_v39  ;;  %646 = vmatprep.mubr.f32.mxu1 %v2876_v40 }
 0x14e   :  { %572 = vmatmul.mubr.f32.gmra.mxu0 %v2881_v41  ;;  %647 = vmatmul.mubr.f32.gmra.mxu1 %v2884_v42 }
 0x14f   :  { %576 = vmatprep.mubr.f32.mxu0 %v2886_v43  ;;  %651 = vmatprep.mubr.f32.mxu1 %v2888_v44 }
 0x152   :  { %577 = vmatmul.mubr.f32.gmra.mxu0 %v2893_v45  ;;  %652 = vmatmul.mubr.f32.gmra.mxu1 %v2896_v46 }
 0x153   :  { %581 = vmatprep.mubr.f32.mxu0 %v2898_v47  ;;  %656 = vmatprep.mubr.f32.mxu1 %v2900_v48 }
 0x156   :  { %582 = vmatmul.mubr.f32.gmra.mxu0 %v2905_v49  ;;  %657 = vmatmul.mubr.f32.gmra.mxu1 %v2908_v50 }
 0x157   :  { %586 = vmatprep.mubr.f32.mxu0 %v2910_v51  ;;  %661 = vmatprep.mubr.f32.mxu1 %v2912_v52 }
 0x15a   :  { %587 = vmatmul.mubr.f32.gmra.mxu0 %v2917_v53  ;;  %662 = vmatmul.mubr.f32.gmra.mxu1 %v2920_v54 }
 0x15b   :  { %591 = vmatprep.mubr.f32.mxu0 %v2922_v55  ;;  %666 = vmatprep.mubr.f32.mxu1 %v2924_v56 }
 0x15e   :  { %592 = vmatmul.mubr.f32.gmra.mxu0 %v2929_v57  ;;  %667 = vmatmul.mubr.f32.gmra.mxu1 %v2932_v58 }
 0x15f   :  { %596 = vmatprep.mubr.f32.mxu0 %v2934_v59  ;;  %671 = vmatprep.mubr.f32.mxu1 %v2936_v60 }
 0x162   :  { %597 = vmatmul.mubr.f32.gmra.mxu0 %v2941_v61  ;;  %672 = vmatmul.mubr.f32.gmra.mxu1 %v2944_v62 }
 0x163   :  { %601 = vmatprep.mubr.f32.mxu0 %v2946_v63  ;;  %676 = vmatprep.mubr.f32.mxu1 %v2948_v0 }
 0x166   :  { %602 = vmatmul.mubr.f32.gmra.mxu0 %v2953_v1  ;;  %677 = vmatmul.mubr.f32.gmra.mxu1 %v2956_v2 }
 0x167   :  { %606 = vmatprep.mubr.f32.mxu0 %v2958_v3  ;;  %681 = vmatprep.mubr.f32.mxu1 %v2960_v4 }
 0x16a   :  { %607 = vmatmul.mubr.f32.gmra.mxu0 %v2965_v5  ;;  %682 = vmatmul.mubr.f32.gmra.mxu1 %v2968_v6 }
 0x16b   :  { %686 = vmatprep.mubr.f32.mxu1 %v2970_v11  ;;  %v731_v11 = vld [vmem:[%s3497_s4 + $0x10] sm:$0xff] }
 0x16c   :  { %2203 = vmatprep.subr.mxu0 %v731_v11 }
 0x16d   :  { %2204 = vmatpush3.msra.mxu0 %v731_v11 }
 0x16e   :  { %687 = vmatmul.mubr.f32.gmra.mxu1 %v2975_v16  ;;  %v3562_v16 = vmov 0.0  }
 0x16f   :  { %691 = vmatprep.mubr.f32.mxu1 %v2977_v21  ;;  %v730_v21 = vld [vmem:[%s3497_s4 + $0x8] sm:$0xff] }
 0x170   :  { %2205 = vmatprep.subr.mxu0 %v730_v21 }
 0x171   :  { %2206 = vmatpush3.msra.mxu0 %v730_v21 }
 0x172   :  { %692 = vmatmul.mubr.f32.gmra.mxu1 %v2981_v26  ;;  %v729_v26 = vld [vmem:[%s3497_s4] sm:$0xff] }
 0x173   :  { %2207 = vmatprep.subr.mxu0 %v729_v26 }
 0x174   :  { %2208 = vmatpush3.msra.mxu0 %v729_v26 }
 0x175   :  { %1066 = vmatprep.subr.mxu0 %v3562_v16 }
 0x1f2   :  { %v538_v11 = vpop.f32.mrf.mxu0  ;;  %v3002_v6 = vpop.f32.mrf.mxu1 }
 0x1f3   :  { %v539_v4 = vadd.f32 %v3000_v36, %v538_v11 }
 0x1f4   :  { %v540_v2 = vpop.f32.mrf.mxu0  ;;  %v615_v21 = vpop.f32.mrf.mxu1 }
 0x1f5   :  { %v697_v0 = vmax.f32 %v539_v4, 0.0 }
 0x1f6   :  { %v543_v62 = vpop.f32.mrf.mxu0  ;;  %v3005_v60 = vpop.f32.mrf.mxu1 }
 0x1f7   :  { %v544_v26 = vadd.f32 %v3000_v36, %v543_v62  ;;  %2209 = vmatprep.mubr.msk.f32.mxu0 %vm738_vm1, %v697_v0 }
 0x1f8   :  { %v545_v58 = vpop.f32.mrf.mxu0  ;;  %v620_v56 = vpop.f32.mrf.mxu1 }
 0x1f9   :  { %v698_v54 = vmax.f32 %v544_v26, 0.0 }
 0x1fa   :  { %v548_v52 = vpop.f32.mrf.mxu0  ;;  %v3009_v50 = vpop.f32.mrf.mxu1 }
 0x1fb   :  { %v549_v48 = vadd.f32 %v3000_v36, %v548_v52  ;;  %2210 = vmatmul.mubr.msk.f32.vlgmr.msra.gmra.mxu0 %vm738_vm1, %v698_v54 }
 0x1fc   :  { %v550_v2 = vpop.f32.mrf.mxu0  ;;  %v625_v11 = vpop.f32.mrf.mxu1 }
 0x1fd   :  { %v699_v4 = vmax.f32 %v549_v48, 0.0 }
 0x1fe   :  { %v553_v21 = vpop.f32.mrf.mxu0  ;;  %v3013_v46 = vpop.f32.mrf.mxu1 }
 0x1ff   :  { %v554_v62 = vadd.f32 %v3000_v36, %v553_v21  ;;  %2212 = vmatprep.mubr.msk.f32.mxu0 %vm738_vm1, %v699_v4 }
 0x200   :  { %v555_v58 = vpop.f32.mrf.mxu0  ;;  %v630_v56 = vpop.f32.mrf.mxu1 }
 0x201   :  { %v700_v0 = vmax.f32 %v554_v62, 0.0 }
 0x202   :  { %v558_v26 = vpop.f32.mrf.mxu0  ;;  %v3017_v44 = vpop.f32.mrf.mxu1 }
 0x203   :  { %v559_v52 = vadd.f32 %v3000_v36, %v558_v26  ;;  %2213 = vmatmul.mubr.msk.f32.gmra.mxu0 %vm738_vm1, %v700_v0 }
 0x204   :  { %v560_v54 = vpop.f32.mrf.mxu0  ;;  %v635_v2 = vpop.f32.mrf.mxu1 }
 0x205   :  { %v701_v48 = vmax.f32 %v559_v52, 0.0 }
 0x206   :  { %v563_v11 = vpop.f32.mrf.mxu0  ;;  %v3021_v42 = vpop.f32.mrf.mxu1 }
 0x207   :  { %v564_v21 = vadd.f32 %v3000_v36, %v563_v11  ;;  %2215 = vmatprep.mubr.msk.f32.mxu0 %vm738_vm1, %v701_v48 }
 0x208   :  { %v565_v4 = vpop.f32.mrf.mxu0  ;;  %v640_v58 = vpop.f32.mrf.mxu1 }
 0x209   :  { %v702_v62 = vmax.f32 %v564_v21, 0.0 }
 0x20a   :  { %v568_v56 = vpop.f32.mrf.mxu0  ;;  %v3025_v40 = vpop.f32.mrf.mxu1 }
 0x20b   :  { %v569_v26 = vadd.f32 %v3000_v36, %v568_v56  ;;  %2216 = vmatmul.mubr.msk.f32.gmra.mxu0 %vm738_vm1, %v702_v62 }
 0x20c   :  { %v570_v0 = vpop.f32.mrf.mxu0  ;;  %v645_v54 = vpop.f32.mrf.mxu1 }
 0x20d   :  { %v703_v52 = vmax.f32 %v569_v26, 0.0 }
 0x20e   :  { %v573_v2 = vpop.f32.mrf.mxu0  ;;  %v3029_v38 = vpop.f32.mrf.mxu1 }
 0x20f   :  { %v574_v11 = vadd.f32 %v3000_v36, %v573_v2  ;;  %2218 = vmatprep.mubr.msk.f32.mxu0 %vm738_vm1, %v703_v52 }
 0x210   :  { %v575_v48 = vpop.f32.mrf.mxu0  ;;  %v650_v4 = vpop.f32.mrf.mxu1 }
 0x211   :  { %v704_v21 = vmax.f32 %v574_v11, 0.0 }
 0x212   :  { %v578_v58 = vpop.f32.mrf.mxu0  ;;  %v3033_v34 = vpop.f32.mrf.mxu1 }
 0x213   :  { %v579_v56 = vadd.f32 %v3000_v36, %v578_v58  ;;  %2219 = vmatmul.mubr.msk.f32.gmra.mxu0 %vm738_vm1, %v704_v21 }
 0x214   :  { %v580_v62 = vpop.f32.mrf.mxu0  ;;  %v655_v0 = vpop.f32.mrf.mxu1 }
 0x215   :  { %v705_v26 = vmax.f32 %v579_v56, 0.0 }
 0x216   :  { %v583_v54 = vpop.f32.mrf.mxu0  ;;  %v3037_v32 = vpop.f32.mrf.mxu1 }
 0x217   :  { %v584_v2 = vadd.f32 %v3000_v36, %v583_v54  ;;  %2221 = vmatprep.mubr.msk.f32.mxu0 %vm738_vm1, %v705_v26 }
 0x218   :  { %v585_v52 = vpop.f32.mrf.mxu0  ;;  %v660_v48 = vpop.f32.mrf.mxu1 }
 0x219   :  { %v706_v11 = vmax.f32 %v584_v2, 0.0 }
 0x21a   :  { %v588_v4 = vpop.f32.mrf.mxu0  ;;  %v3041_v30 = vpop.f32.mrf.mxu1 }
 0x21b   :  { %v589_v58 = vadd.f32 %v3000_v36, %v588_v4  ;;  %2222 = vmatmul.mubr.msk.f32.gmra.mxu0 %vm738_vm1, %v706_v11 }
 0x21c   :  { %v590_v21 = vpop.f32.mrf.mxu0  ;;  %v665_v62 = vpop.f32.mrf.mxu1 }
 0x21d   :  { %v707_v56 = vmax.f32 %v589_v58, 0.0 }
 0x21e   :  { %v593_v0 = vpop.f32.mrf.mxu0  ;;  %v668_v28 = vpop.f32.mrf.mxu1 }
 0x21f   :  { %v594_v25 = vadd.f32 %v3000_v36, %v593_v0  ;;  %2224 = vmatprep.mubr.msk.f32.mxu0 %vm738_vm1, %v707_v56 }
 0x220   :  { %v595_v26 = vpop.f32.mrf.mxu0  ;;  %v670_v54 = vpop.f32.mrf.mxu1 }
 0x221   :  { %v708_v52 = vmax.f32 %v594_v25, 0.0  ;;  %v614_v25 = vadd.f32 %v3000_v36, %v3002_v6  ;;  %v629_v6 = vadd.f32 %v3000_v36, %v3013_v46 }
 0x222   :  { %v598_v2 = vpop.f32.mrf.mxu0  ;;  %v673_v48 = vpop.f32.mrf.mxu1 }
 0x223   :  { %v599_v23 = vadd.f32 %v3000_v36, %v598_v2  ;;  %2225 = vmatmul.mubr.msk.f32.gmra.mxu0 %vm738_vm1, %v708_v52  ;;  %v619_v52 = vadd.f32 %v3000_v36, %v3005_v60 }
 0x224   :  { %v600_v4 = vpop.f32.mrf.mxu0  ;;  %v675_v11 = vpop.f32.mrf.mxu1 }
 0x225   :  { %v709_v21 = vmax.f32 %v599_v23, 0.0 }
 0x226   :  { %v603_v62 = vpop.f32.mrf.mxu0  ;;  %v678_v58 = vpop.f32.mrf.mxu1 }
 0x227   :  { %v604_v20 = vadd.f32 %v3000_v36, %v603_v62  ;;  %2227 = vmatprep.mubr.msk.f32.mxu0 %vm738_vm1, %v709_v21  ;;  %v712_v62 = vmax.f32 %v614_v25, 0.0  ;;  %v624_v21 = vadd.f32 %v3000_v36, %v3009_v50  ;;  %v639_v50 = vadd.f32 %v3000_v36, %v3021_v42 }
 0x228   :  { %v605_v0 = vpop.f32.mrf.mxu0  ;;  %v680_v56 = vpop.f32.mrf.mxu1  ;;  %v654_v42 = vadd.f32 %v3000_v36, %v3033_v34 }
 0x229   :  { %v710_v26 = vmax.f32 %v604_v20, 0.0  ;;  %v713_v0 = vmax.f32 %v619_v52, 0.0  ;;  %v714_v56 = vmax.f32 %v624_v21, 0.0 }
 0x22a   :  { %v608_v54 = vpop.f32.mrf.mxu0  ;;  %v683_v18 = vpop.f32.mrf.mxu1 }
 0x22b   :  { %v609_v2 = vadd.f32 %v3000_v36, %v608_v54  ;;  %2228 = vmatmul.mubr.msk.f32.gmra.mxu0 %vm738_vm1, %v710_v26  ;;  %v634_v26 = vadd.f32 %v3000_v36, %v3017_v44  ;;  %v715_v54 = vmax.f32 %v629_v6, 0.0  ;;  %v674_v6 = vadd.f32 %v3000_v36, %v673_v48 }
 0x22c   :  { %v610_v23 = vpop.f32.mrf.mxu0  ;;  %v685_v4 = vpop.f32.mrf.mxu1 }
 0x22d   :  { %v711_v11 = vmax.f32 %v609_v2, 0.0  ;;  %v716_v46 = vmax.f32 %v634_v26, 0.0  ;;  %v644_v2 = vadd.f32 %v3000_v36, %v3025_v40  ;;  %v717_v23 = vmax.f32 %v639_v50, 0.0 }
 0x22e   :  { %v688_v20 = vpop.f32.mrf.mxu1  ;;  %v649_v4 = vadd.f32 %v3000_v36, %v3029_v38  ;;  %v720_v40 = vmax.f32 %v654_v42, 0.0  ;;  %v664_v38 = vadd.f32 %v3000_v36, %v3041_v30  ;;  %v724_v30 = vmax.f32 %v674_v6, 0.0 }
 0x22f   :  { %2230 = vmatprep.mubr.msk.f32.mxu0 %vm738_vm1, %v711_v11  ;;  %v718_v44 = vmax.f32 %v644_v2, 0.0  ;;  %v684_v26 = vadd.f32 %v3000_v36, %v683_v18 }
 0x230   :  { %2231 = vmatmul.mubr.msk.f32.gmra.mxu0 %vm738_vm1, %v712_v62  ;;  %v690_v60 = vpop.f32.mrf.mxu1  ;;  %v719_v11 = vmax.f32 %v649_v4, 0.0  ;;  %v659_v62 = vadd.f32 %v3000_v36, %v3037_v32  ;;  %v722_v34 = vmax.f32 %v664_v38, 0.0  ;;  %v679_v32 = vadd.f32 %v3000_v36, %v678_v58 }
 0x231   :  { %2233 = vmatprep.mubr.msk.f32.mxu0 %vm738_vm1, %v713_v0  ;;  %v669_v0 = vadd.f32 %v3000_v36, %v668_v28  ;;  %v726_v48 = vmax.f32 %v684_v26, 0.0 }
 0x232   :  { %v693_v25 = vpop.f32.mrf.mxu1  ;;  %v721_v21 = vmax.f32 %v659_v62, 0.0  ;;  %v725_v28 = vmax.f32 %v679_v32, 0.0 }
 0x233   :  { %v723_v60 = vmax.f32 %v669_v0, 0.0 }
 0x234   :  { %2234 = vmatmul.mubr.msk.f32.gmra.mxu0 %vm738_vm1, %v714_v56  ;;  %v695_v52 = vpop.f32.mrf.mxu1  ;;  %v689_v56 = vadd.f32 %v3000_v36, %v688_v20 }
 0x235   :  { %2236 = vmatprep.mubr.msk.f32.mxu0 %vm738_vm1, %v715_v54  ;;  %v694_v54 = vadd.f32 %v3000_v36, %v693_v25 }
 0x236   :  { %v727_v50 = vmax.f32 %v689_v56, 0.0 }
 0x237   :  { %v728_v52 = vmax.f32 %v694_v54, 0.0 }
 0x238   :  { %2237 = vmatmul.mubr.msk.f32.gmra.mxu0 %vm738_vm1, %v716_v46 }
 0x239   :  { %2239 = vmatprep.mubr.msk.f32.mxu0 %vm738_vm1, %v717_v23 }
 0x23c   :  { %2240 = vmatmul.mubr.msk.f32.gmra.mxu0 %vm738_vm1, %v718_v44 }
 0x23d   :  { %2242 = vmatprep.mubr.msk.f32.mxu0 %vm738_vm1, %v719_v11 }
 0x240   :  { %2243 = vmatmul.mubr.msk.f32.gmra.mxu0 %vm738_vm1, %v720_v40 }
 0x241   :  { %2245 = vmatprep.mubr.msk.f32.mxu0 %vm738_vm1, %v721_v21 }
 0x244   :  { %2246 = vmatmul.mubr.msk.f32.gmra.mxu0 %vm738_vm1, %v722_v34 }
 0x245   :  { %2248 = vmatprep.mubr.msk.f32.mxu0 %vm738_vm1, %v723_v60 }
 0x248   :  { %2249 = vmatmul.mubr.msk.f32.gmra.mxu0 %vm738_vm1, %v724_v30 }
 0x249   :  { %2251 = vmatprep.mubr.msk.f32.mxu0 %vm738_vm1, %v725_v28 }
 0x24c   :  { %2252 = vmatmul.mubr.msk.f32.gmra.mxu0 %vm738_vm1, %v726_v48 }
 0x24d   :  { %2254 = vmatprep.mubr.msk.f32.mxu0 %vm738_vm1, %v727_v50 }
 0x250   :  { %2255 = vmatmul.mubr.msk.f32.gmra.mxu0 %vm738_vm1, %v728_v52 }
 0x251   :  { %1130 = vmatprep.mubr.f32.mxu0 %v2669_v37 }
 0x2bb   :  { %v2211_v58 = vpop.f32.mrf.mxu0 }
 0x2bd   :  { %v901_v18 = vpop.f32.mrf.mxu0 }
 0x2c3   :  { %v2214_v20 = vpop.f32.mrf.mxu0 }
 0x2c5   :  { %v911_v46 = vpop.f32.mrf.mxu0 }
 0x2cb   :  { %v2217_v2 = vpop.f32.mrf.mxu0 }
 0x2cd   :  { %v921_v23 = vpop.f32.mrf.mxu0 }
 0x2d3   :  { %v2220_v36 = vpop.f32.mrf.mxu0 }
 0x2d5   :  { %v931_v25 = vpop.f32.mrf.mxu0 }
 0x2db   :  { %v2223_v4 = vpop.f32.mrf.mxu0 }
 0x2dd   :  { %v941_v44 = vpop.f32.mrf.mxu0 }
 0x2e3   :  { %v2226_v42 = vpop.f32.mrf.mxu0 }
 0x2e5   :  { %v951_v11 = vpop.f32.mrf.mxu0 }
 0x2eb   :  { %v2229_v62 = vpop.f32.mrf.mxu0 }
 0x2ed   :  { %v961_v40 = vpop.f32.mrf.mxu0 }
 0x2f0   :  { %v2232_v38 = vpop.f32.mrf.mxu0 }
 0x2f1   :  { %1067 = vmatpush1.msra.mxu0 %v2232_v38 }
 0x2f2   :  { %v971_v21 = vpop.f32.mrf.mxu0  ;;  %1068 = vmatprep.subr.mxu0 %v3562_v16 }
 0x2f3   :  { %1069 = vmatpush1.msra.mxu0 %v971_v21 }
 0x2f4   :  { %v3101_v37 = vpop.f32.mrf.mxu0  ;;  %1070 = vmatprep.subr.mxu0 %v3562_v16 }
 0x2f5   :  { %1071 = vmatpush1.msra.mxu0 %v2229_v62 }
 0x2f6   :  { %v3104_v0 = vpop.f32.mrf.mxu0  ;;  %1072 = vmatprep.subr.mxu0 %v3562_v16 }
 0x2f7   :  { %1073 = vmatpush1.msra.mxu0 %v961_v40 }
 0x2f8   :  { %v2238_v34 = vpop.f32.mrf.mxu0  ;;  %1074 = vmatprep.subr.mxu0 %v3562_v16 }
 0x2f9   :  { %1075 = vmatpush1.msra.mxu0 %v2226_v42 }
 0x2fa   :  { %v991_v6 = vpop.f32.mrf.mxu0  ;;  %1076 = vmatprep.subr.mxu0 %v3562_v16 }
 0x2fb   :  { %1077 = vmatpush1.msra.mxu0 %v951_v11 }
 0x2fc   :  { %v2241_v60 = vpop.f32.mrf.mxu0  ;;  %1078 = vmatprep.subr.mxu0 %v3562_v16 }
 0x2fd   :  { %1079 = vmatpush1.msra.mxu0 %v2223_v4 }
 0x2fe   :  { %v1001_v32 = vpop.f32.mrf.mxu0  ;;  %1080 = vmatprep.subr.mxu0 %v3562_v16 }
 0x2ff   :  { %1081 = vmatpush1.msra.mxu0 %v941_v44 }
 0x300   :  { %v2244_v56 = vpop.f32.mrf.mxu0  ;;  %1082 = vmatprep.subr.mxu0 %v3562_v16 }
 0x301   :  { %1083 = vmatpush1.msra.mxu0 %v2220_v36  ;;  %v3591_v36 = vld [vmem:[#allocation33_spill] sm:$0xff] }
 0x302   :  { %v1011_v30 = vpop.f32.mrf.mxu0  ;;  %1084 = vmatprep.subr.mxu0 %v3562_v16 }
 0x303   :  { %1085 = vmatpush1.msra.mxu0 %v931_v25  ;;  %v3230_v25 = vld [vmem:[%s3498_s5] ss:$0 sm:$0xff] }
 0x304   :  { %v2247_v26 = vpop.f32.mrf.mxu0  ;;  %1086 = vmatprep.subr.mxu0 %v3562_v16 }
 0x305   :  { %1087 = vmatpush1.msra.mxu0 %v2217_v2 }
 0x306   :  { %v1021_v28 = vpop.f32.mrf.mxu0  ;;  %1088 = vmatprep.subr.mxu0 %v3562_v16 }
 0x307   :  { %1089 = vmatpush1.msra.mxu0 %v921_v23 }
 0x308   :  { %v2250_v54 = vpop.f32.mrf.mxu0  ;;  %1090 = vmatprep.subr.mxu0 %v3562_v16 }
 0x309   :  { %1091 = vmatpush1.msra.mxu0 %v2214_v20  ;;  %v1328_v20 = vld [vmem:[%s3499_s6 + $0x28] sm:$0xff] }
 0x30a   :  { %v1031_v50 = vpop.f32.mrf.mxu0  ;;  %1092 = vmatprep.subr.mxu0 %v3562_v16 }
 0x30b   :  { %1093 = vmatpush1.msra.mxu0 %v911_v46  ;;  %v1327_v46 = vld [vmem:[%s3499_s6 + $0x20] sm:$0xff] }
 0x30c   :  { %v2253_v48 = vpop.f32.mrf.mxu0  ;;  %1094 = vmatprep.subr.mxu0 %v3562_v16 }
 0x30d   :  { %1095 = vmatpush1.msra.mxu0 %v2211_v58  ;;  %v1330_v58 = vld [vmem:[%s3499_s6 + $0x38] sm:$0xff] }
 0x30e   :  { %v1041_v52 = vpop.f32.mrf.mxu0  ;;  %1096 = vmatprep.subr.mxu0 %v3562_v16  ;;  %2257 = vmatprep.subr.mxu1 %v1330_v58 }
 0x30f   :  { %1097 = vmatpush1.msra.mxu0 %v901_v18  ;;  %v1329_v18 = vld [vmem:[%s3499_s6 + $0x30] sm:$0xff]  ;;  %2258 = vmatpush3.msra.mxu1 %v1330_v58 }
 0x310   :  { %v2256_v2 = vpop.f32.mrf.mxu0  ;;  %1098 = vmatprep.subr.mxu0 %v3562_v16  ;;  %2259 = vmatprep.subr.mxu1 %v1329_v18 }
 0x311   :  { %1099 = vmatpush2.msra.mxu0 %v2256_v2  ;;  %2260 = vmatpush3.msra.mxu1 %v1329_v18 }
 0x312   :  { %v1051_v23 = vpop.f32.mrf.mxu0  ;;  %1100 = vmatprep.subr.mxu0 %v3562_v16  ;;  %2261 = vmatprep.subr.mxu1 %v1328_v20 }
 0x313   :  { %1101 = vmatpush2.msra.mxu0 %v1051_v23  ;;  %2262 = vmatpush3.msra.mxu1 %v1328_v20 }
 0x314   :  { %1102 = vmatprep.subr.mxu0 %v3562_v16  ;;  %2263 = vmatprep.subr.mxu1 %v1327_v46 }
 0x315   :  { %1103 = vmatpush2.msra.mxu0 %v2253_v48  ;;  %2264 = vmatpush3.msra.mxu1 %v1327_v46 }
 0x316   :  { %1104 = vmatprep.subr.mxu0 %v3562_v16 }
 0x317   :  { %1105 = vmatpush2.msra.mxu0 %v1041_v52 }
 0x318   :  { %1106 = vmatprep.subr.mxu0 %v3562_v16 }
 0x319   :  { %1107 = vmatpush2.msra.mxu0 %v2250_v54 }
 0x31a   :  { %1108 = vmatprep.subr.mxu0 %v3562_v16 }
 0x31b   :  { %1109 = vmatpush2.msra.mxu0 %v1031_v50 }
 0x31c   :  { %1110 = vmatprep.subr.mxu0 %v3562_v16 }
 0x31d   :  { %1111 = vmatpush2.msra.mxu0 %v2247_v26 }
 0x31e   :  { %1112 = vmatprep.subr.mxu0 %v3562_v16 }
 0x31f   :  { %1113 = vmatpush2.msra.mxu0 %v1021_v28 }
 0x320   :  { %1114 = vmatprep.subr.mxu0 %v3562_v16 }
 0x321   :  { %1115 = vmatpush2.msra.mxu0 %v2244_v56 }
 0x322   :  { %1116 = vmatprep.subr.mxu0 %v3562_v16 }
 0x323   :  { %1117 = vmatpush2.msra.mxu0 %v1011_v30 }
 0x324   :  { %1118 = vmatprep.subr.mxu0 %v3562_v16 }
 0x325   :  { %1119 = vmatpush2.msra.mxu0 %v2241_v60 }
 0x326   :  { %1120 = vmatprep.subr.mxu0 %v3562_v16 }
 0x327   :  { %1121 = vmatpush2.msra.mxu0 %v1001_v32 }
 0x328   :  { %1122 = vmatprep.subr.mxu0 %v3562_v16 }
 0x329   :  { %1123 = vmatpush2.msra.mxu0 %v2238_v34 }
 0x32a   :  { %1124 = vmatprep.subr.mxu0 %v3562_v16 }
 0x32b   :  { %1125 = vmatpush2.msra.mxu0 %v991_v6 }
 0x32c   :  { %1126 = vmatprep.subr.mxu0 %v3562_v16 }
 0x32d   :  { %1127 = vmatpush2.msra.mxu0 %v3101_v37 }
 0x32e   :  { %1128 = vmatprep.subr.mxu0 %v3562_v16 }
 0x32f   :  { %1129 = vmatpush2.msra.mxu0 %v3104_v0 }
 0x330   :  { %1131 = vmatmul.mubr.f32.vlgmr.msra.gmra.mxu0 %v2782_v7  ;;  %v3178_v7 = vld [vmem:[#allocation2 + $0xf8] sm:$0xff] }
 0x331   :  { %1135 = vmatprep.mubr.f32.mxu0 %v2788_v9  ;;  %v1326_v9 = vld [vmem:[%s3499_s6 + $0x18] sm:$0xff] }
 0x332   :  { %2265 = vmatprep.subr.mxu1 %v1326_v9 }
 0x333   :  { %2266 = vmatpush3.msra.mxu1 %v1326_v9 }
 0x334   :  { %1136 = vmatmul.mubr.f32.gmra.mxu0 %v2800_v12  ;;  %v1325_v12 = vld [vmem:[%s3499_s6 + $0x10] sm:$0xff] }
 0x335   :  { %1140 = vmatprep.mubr.f32.mxu0 %v2805_v14  ;;  %2267 = vmatprep.subr.mxu1 %v1325_v12  ;;  %v3563_v14 = vld [vmem:[#allocation5_spill] sm:$0xff] }
 0x336   :  { %2268 = vmatpush3.msra.mxu1 %v1325_v12 }
 0x338   :  { %1141 = vmatmul.mubr.f32.gmra.mxu0 %v2815_v17  ;;  %v3566_v17 = vld [vmem:[#allocation8_spill] sm:$0xff] }
 0x339   :  { %1145 = vmatprep.mubr.f32.mxu0 %v2820_v19  ;;  %v3567_v19 = vld [vmem:[#allocation9_spill] sm:$0xff] }
 0x33c   :  { %1146 = vmatmul.mubr.f32.gmra.mxu0 %v2830_v22  ;;  %v3568_v22 = vld [vmem:[#allocation10_spill] sm:$0xff] }
 0x33d   :  { %1150 = vmatprep.mubr.f32.mxu0 %v2835_v24  ;;  %v3569_v24 = vld [vmem:[#allocation11_spill] sm:$0xff] }
 0x340   :  { %1151 = vmatmul.mubr.f32.gmra.mxu0 %v2845_v27  ;;  %v3570_v27 = vld [vmem:[#allocation12_spill] sm:$0xff] }
 0x341   :  { %1155 = vmatprep.mubr.f32.mxu0 %v2850_v29  ;;  %v3571_v29 = vld [vmem:[#allocation13_spill] sm:$0xff] }
 0x344   :  { %1156 = vmatmul.mubr.f32.gmra.mxu0 %v2857_v31  ;;  %v3572_v31 = vld [vmem:[#allocation14_spill] sm:$0xff] }
 0x345   :  { %1160 = vmatprep.mubr.f32.mxu0 %v2862_v33  ;;  %v3573_v33 = vld [vmem:[#allocation15_spill] sm:$0xff] }
 0x348   :  { %1161 = vmatmul.mubr.f32.gmra.mxu0 %v2869_v35  ;;  %v3574_v35 = vld [vmem:[#allocation16_spill] sm:$0xff] }
 0x349   :  { %1165 = vmatprep.mubr.f32.mxu0 %v2874_v39  ;;  %v3575_v39 = vld [vmem:[#allocation17_spill] sm:$0xff] }
 0x34c   :  { %1166 = vmatmul.mubr.f32.gmra.mxu0 %v2881_v41  ;;  %v3576_v41 = vld [vmem:[#allocation18_spill] sm:$0xff] }
 0x34d   :  { %1170 = vmatprep.mubr.f32.mxu0 %v2886_v43  ;;  %v3577_v43 = vld [vmem:[#allocation19_spill] sm:$0xff] }
 0x350   :  { %1171 = vmatmul.mubr.f32.gmra.mxu0 %v2893_v45  ;;  %v3578_v45 = vld [vmem:[#allocation20_spill] sm:$0xff] }
 0x351   :  { %1175 = vmatprep.mubr.f32.mxu0 %v2898_v47  ;;  %v3579_v47 = vld [vmem:[#allocation21_spill] sm:$0xff] }
 0x354   :  { %1176 = vmatmul.mubr.f32.gmra.mxu0 %v2905_v49  ;;  %v3580_v49 = vld [vmem:[#allocation22_spill] sm:$0xff] }
 0x355   :  { %1180 = vmatprep.mubr.f32.mxu0 %v2910_v51  ;;  %v3581_v51 = vld [vmem:[#allocation23_spill] sm:$0xff] }
 0x358   :  { %1181 = vmatmul.mubr.f32.gmra.mxu0 %v2917_v53  ;;  %v3582_v53 = vld [vmem:[#allocation24_spill] sm:$0xff] }
 0x359   :  { %1185 = vmatprep.mubr.f32.mxu0 %v2922_v55  ;;  %v3583_v55 = vld [vmem:[#allocation25_spill] sm:$0xff] }
 0x35c   :  { %1186 = vmatmul.mubr.f32.gmra.mxu0 %v2929_v57  ;;  %v3584_v57 = vld [vmem:[#allocation26_spill] sm:$0xff] }
 0x35d   :  { %1190 = vmatprep.mubr.f32.mxu0 %v2934_v59  ;;  %v3585_v59 = vld [vmem:[#allocation27_spill] sm:$0xff] }
 0x360   :  { %1191 = vmatmul.mubr.f32.gmra.mxu0 %v2941_v61  ;;  %v3586_v61 = vld [vmem:[#allocation28_spill] sm:$0xff] }
 0x361   :  { %1195 = vmatprep.mubr.f32.mxu0 %v2946_v63  ;;  %v3587_v63 = vld [vmem:[#allocation29_spill] sm:$0xff] }
 0x364   :  { %1196 = vmatmul.mubr.f32.gmra.mxu0 %v2953_v1  ;;  %v3588_v1 = vld [vmem:[#allocation30_spill] sm:$0xff] }
 0x365   :  { %1200 = vmatprep.mubr.f32.mxu0 %v2958_v3  ;;  %v3589_v3 = vld [vmem:[#allocation31_spill] sm:$0xff] }
 0x368   :  { %1201 = vmatmul.mubr.f32.gmra.mxu0 %v2965_v5  ;;  %v3590_v5 = vld [vmem:[#allocation32_spill] sm:$0xff] }
 0x369   :  { %1205 = vmatprep.mubr.f32.mxu0 %v3178_v7 }
 0x36c   :  { %1206 = vmatmul.mubr.f32.gmra.mxu0 %v2784_v8  ;;  %v1324_v8 = vld [vmem:[%s3499_s6 + $0x8] sm:$0xff] }
 0x36d   :  { %1210 = vmatprep.mubr.f32.mxu0 %v2790_v10  ;;  %v3564_v10 = vld [vmem:[#allocation6_spill] sm:$0xff]  ;;  %2269 = vmatprep.subr.mxu1 %v1324_v8 }
 0x36e   :  { %2270 = vmatpush3.msra.mxu1 %v1324_v8 }
 0x370   :  { %1211 = vmatmul.mubr.f32.gmra.mxu0 %v2803_v13  ;;  %v1323_v13 = vld [vmem:[%s3499_s6] sm:$0xff] }
 0x371   :  { %1215 = vmatprep.mubr.f32.mxu0 %v2807_v15  ;;  %2271 = vmatprep.subr.mxu1 %v1323_v13  ;;  %v3565_v15 = vld [vmem:[#allocation7_spill] sm:$0xff] }
 0x372   :  { %2272 = vmatpush3.msra.mxu1 %v1323_v13 }
 0x373   :  { %1659 = vmatprep.subr.mxu1 %v3562_v16 }
 0x374   :  { %1216 = vmatmul.mubr.f32.gmra.mxu0 %v3563_v14 }
 0x375   :  { %1220 = vmatprep.mubr.f32.mxu0 %v3564_v10 }
 0x378   :  { %1221 = vmatmul.mubr.f32.gmra.mxu0 %v3565_v15 }
 0x379   :  { %1225 = vmatprep.mubr.f32.mxu0 %v3566_v17 }
 0x37c   :  { %1226 = vmatmul.mubr.f32.gmra.mxu0 %v3567_v19 }
 0x37d   :  { %1230 = vmatprep.mubr.f32.mxu0 %v3568_v22 }
 0x380   :  { %1231 = vmatmul.mubr.f32.gmra.mxu0 %v3569_v24 }
 0x381   :  { %1235 = vmatprep.mubr.f32.mxu0 %v3570_v27 }
 0x384   :  { %1236 = vmatmul.mubr.f32.gmra.mxu0 %v3571_v29 }
 0x385   :  { %1240 = vmatprep.mubr.f32.mxu0 %v3572_v31 }
 0x388   :  { %1241 = vmatmul.mubr.f32.gmra.mxu0 %v3573_v33 }
 0x389   :  { %1245 = vmatprep.mubr.f32.mxu0 %v3574_v35 }
 0x38c   :  { %1246 = vmatmul.mubr.f32.gmra.mxu0 %v3575_v39 }
 0x38d   :  { %1250 = vmatprep.mubr.f32.mxu0 %v3576_v41 }
 0x390   :  { %1251 = vmatmul.mubr.f32.gmra.mxu0 %v3577_v43 }
 0x391   :  { %1255 = vmatprep.mubr.f32.mxu0 %v3578_v45 }
 0x394   :  { %1256 = vmatmul.mubr.f32.gmra.mxu0 %v3579_v47 }
 0x395   :  { %1260 = vmatprep.mubr.f32.mxu0 %v3580_v49 }
 0x398   :  { %1261 = vmatmul.mubr.f32.gmra.mxu0 %v3581_v51 }
 0x399   :  { %1265 = vmatprep.mubr.f32.mxu0 %v3582_v53 }
 0x39c   :  { %1266 = vmatmul.mubr.f32.gmra.mxu0 %v3583_v55 }
 0x39d   :  { %1270 = vmatprep.mubr.f32.mxu0 %v3584_v57 }
 0x3a0   :  { %1271 = vmatmul.mubr.f32.gmra.mxu0 %v3585_v59 }
 0x3a1   :  { %1275 = vmatprep.mubr.f32.mxu0 %v3586_v61 }
 0x3a4   :  { %1276 = vmatmul.mubr.f32.gmra.mxu0 %v3587_v63 }
 0x3a5   :  { %1280 = vmatprep.mubr.f32.mxu0 %v3588_v1 }
 0x3a8   :  { %1281 = vmatmul.mubr.f32.gmra.mxu0 %v3589_v3 }
 0x3a9   :  { %1285 = vmatprep.mubr.f32.mxu0 %v3590_v5 }
 0x3ac   :  { %1286 = vmatmul.mubr.f32.gmra.mxu0 %v3591_v36 }
 0x3f0   :  { %v1132_v4 = vpop.f32.mrf.mxu0 }
 0x3f1   :  { %v1133_v44 = vadd.f32 %v3230_v25, %v1132_v4 }
 0x3f2   :  { %v1134_v42 = vpop.f32.mrf.mxu0 }
 0x3f3   :  { %v1291_v11 = vmax.f32 %v1133_v44, 0.0 }
 0x3f4   :  { %v1137_v62 = vpop.f32.mrf.mxu0 }
 0x3f5   :  { %v1138_v40 = vadd.f32 %v3230_v25, %v1137_v62  ;;  %2273 = vmatprep.mubr.msk.f32.mxu1 %vm738_vm1, %v1291_v11 }
 0x3f6   :  { %v1139_v38 = vpop.f32.mrf.mxu0 }
 0x3f7   :  { %v1292_v21 = vmax.f32 %v1138_v40, 0.0 }
 0x3f8   :  { %v1142_v37 = vpop.f32.mrf.mxu0 }
 0x3f9   :  { %v1143_v0 = vadd.f32 %v3230_v25, %v1142_v37  ;;  %2274 = vmatmul.mubr.msk.f32.vlgmr.msra.gmra.mxu1 %vm738_vm1, %v1292_v21 }
 0x3fa   :  { %v1144_v34 = vpop.f32.mrf.mxu0 }
 0x3fb   :  { %v1293_v6 = vmax.f32 %v1143_v0, 0.0 }
 0x3fc   :  { %v1147_v60 = vpop.f32.mrf.mxu0 }
 0x3fd   :  { %v1148_v32 = vadd.f32 %v3230_v25, %v1147_v60  ;;  %2276 = vmatprep.mubr.msk.f32.mxu1 %vm738_vm1, %v1293_v6 }
 0x3fe   :  { %v1149_v56 = vpop.f32.mrf.mxu0 }
 0x3ff   :  { %v1294_v30 = vmax.f32 %v1148_v32, 0.0 }
 0x400   :  { %v1152_v26 = vpop.f32.mrf.mxu0 }
 0x401   :  { %v1153_v28 = vadd.f32 %v3230_v25, %v1152_v26  ;;  %2277 = vmatmul.mubr.msk.f32.gmra.mxu1 %vm738_vm1, %v1294_v30 }
 0x402   :  { %v1154_v54 = vpop.f32.mrf.mxu0 }
 0x403   :  { %v1295_v50 = vmax.f32 %v1153_v28, 0.0 }
 0x404   :  { %v1157_v48 = vpop.f32.mrf.mxu0 }
 0x405   :  { %v1158_v52 = vadd.f32 %v3230_v25, %v1157_v48  ;;  %2279 = vmatprep.mubr.msk.f32.mxu1 %vm738_vm1, %v1295_v50 }
 0x406   :  { %v1159_v2 = vpop.f32.mrf.mxu0 }
 0x407   :  { %v1296_v23 = vmax.f32 %v1158_v52, 0.0 }
 0x408   :  { %v1162_v58 = vpop.f32.mrf.mxu0 }
 0x409   :  { %v1163_v18 = vadd.f32 %v3230_v25, %v1162_v58  ;;  %2280 = vmatmul.mubr.msk.f32.gmra.mxu1 %vm738_vm1, %v1296_v23 }
 0x40a   :  { %v1164_v20 = vpop.f32.mrf.mxu0 }
 0x40b   :  { %v1297_v46 = vmax.f32 %v1163_v18, 0.0 }
 0x40c   :  { %v1167_v9 = vpop.f32.mrf.mxu0 }
 0x40d   :  { %v1168_v12 = vadd.f32 %v3230_v25, %v1167_v9  ;;  %2282 = vmatprep.mubr.msk.f32.mxu1 %vm738_vm1, %v1297_v46 }
 0x40e   :  { %v1169_v14 = vpop.f32.mrf.mxu0 }
 0x40f   :  { %v1298_v8 = vmax.f32 %v1168_v12, 0.0 }
 0x410   :  { %v1172_v10 = vpop.f32.mrf.mxu0 }
 0x411   :  { %v1173_v13 = vadd.f32 %v3230_v25, %v1172_v10  ;;  %2283 = vmatmul.mubr.msk.f32.gmra.mxu1 %vm738_vm1, %v1298_v8 }
 0x412   :  { %v1174_v15 = vpop.f32.mrf.mxu0 }
 0x413   :  { %v1299_v17 = vmax.f32 %v1173_v13, 0.0 }
 0x414   :  { %v1177_v19 = vpop.f32.mrf.mxu0 }
 0x415   :  { %v1178_v22 = vadd.f32 %v3230_v25, %v1177_v19  ;;  %2285 = vmatprep.mubr.msk.f32.mxu1 %vm738_vm1, %v1299_v17 }
 0x416   :  { %v1179_v24 = vpop.f32.mrf.mxu0 }
 0x417   :  { %v1300_v27 = vmax.f32 %v1178_v22, 0.0 }
 0x418   :  { %v1182_v29 = vpop.f32.mrf.mxu0 }
 0x419   :  { %v1183_v31 = vadd.f32 %v3230_v25, %v1182_v29  ;;  %2286 = vmatmul.mubr.msk.f32.gmra.mxu1 %vm738_vm1, %v1300_v27 }
 0x41a   :  { %v1184_v33 = vpop.f32.mrf.mxu0 }
 0x41b   :  { %v1301_v35 = vmax.f32 %v1183_v31, 0.0 }
 0x41c   :  { %v1187_v39 = vpop.f32.mrf.mxu0 }
 0x41d   :  { %v1188_v41 = vadd.f32 %v3230_v25, %v1187_v39  ;;  %2288 = vmatprep.mubr.msk.f32.mxu1 %vm738_vm1, %v1301_v35 }
 0x41e   :  { %v1189_v43 = vpop.f32.mrf.mxu0 }
 0x41f   :  { %v1302_v45 = vmax.f32 %v1188_v41, 0.0 }
 0x420   :  { %v1192_v47 = vpop.f32.mrf.mxu0 }
 0x421   :  { %v1193_v49 = vadd.f32 %v3230_v25, %v1192_v47  ;;  %2289 = vmatmul.mubr.msk.f32.gmra.mxu1 %vm738_vm1, %v1302_v45 }
 0x422   :  { %v1194_v51 = vpop.f32.mrf.mxu0 }
 0x423   :  { %v1303_v53 = vmax.f32 %v1193_v49, 0.0 }
 0x424   :  { %v1197_v55 = vpop.f32.mrf.mxu0 }
 0x425   :  { %v1198_v57 = vadd.f32 %v3230_v25, %v1197_v55  ;;  %2291 = vmatprep.mubr.msk.f32.mxu1 %vm738_vm1, %v1303_v53 }
 0x426   :  { %v1199_v59 = vpop.f32.mrf.mxu0 }
 0x427   :  { %v1304_v61 = vmax.f32 %v1198_v57, 0.0 }
 0x428   :  { %v1202_v63 = vpop.f32.mrf.mxu0 }
 0x429   :  { %v1203_v1 = vadd.f32 %v3230_v25, %v1202_v63  ;;  %2292 = vmatmul.mubr.msk.f32.gmra.mxu1 %vm738_vm1, %v1304_v61 }
 0x42a   :  { %v1204_v3 = vpop.f32.mrf.mxu0 }
 0x42b   :  { %v1305_v5 = vmax.f32 %v1203_v1, 0.0 }
 0x42c   :  { %v1207_v36 = vpop.f32.mrf.mxu0 }
 0x42d   :  { %v1208_v4 = vadd.f32 %v3230_v25, %v1207_v36  ;;  %2294 = vmatprep.mubr.msk.f32.mxu1 %vm738_vm1, %v1305_v5 }
 0x42e   :  { %v1209_v44 = vpop.f32.mrf.mxu0 }
 0x42f   :  { %v1306_v42 = vmax.f32 %v1208_v4, 0.0 }
 0x430   :  { %v1212_v11 = vpop.f32.mrf.mxu0 }
 0x431   :  { %v1213_v62 = vadd.f32 %v3230_v25, %v1212_v11  ;;  %2295 = vmatmul.mubr.msk.f32.gmra.mxu1 %vm738_vm1, %v1306_v42 }
 0x432   :  { %v1214_v40 = vpop.f32.mrf.mxu0 }
 0x433   :  { %v1307_v38 = vmax.f32 %v1213_v62, 0.0 }
 0x434   :  { %v1217_v21 = vpop.f32.mrf.mxu0 }
 0x435   :  { %v1218_v37 = vadd.f32 %v3230_v25, %v1217_v21  ;;  %2297 = vmatprep.mubr.msk.f32.mxu1 %vm738_vm1, %v1307_v38  ;;  %v2390_v38 = vld [vmem:[#allocation2 + $0x8] sm:$0xff] }
 0x436   :  { %v1219_v0 = vpop.f32.mrf.mxu0 }
 0x437   :  { %v1308_v34 = vmax.f32 %v1218_v37, 0.0 }
 0x438   :  { %v1222_v6 = vpop.f32.mrf.mxu0 }
 0x439   :  { %v1223_v60 = vadd.f32 %v3230_v25, %v1222_v6  ;;  %2298 = vmatmul.mubr.msk.f32.gmra.mxu1 %vm738_vm1, %v1308_v34 }
 0x43a   :  { %v1224_v32 = vpop.f32.mrf.mxu0 }
 0x43b   :  { %v1309_v56 = vmax.f32 %v1223_v60, 0.0 }
 0x43c   :  { %v1227_v30 = vpop.f32.mrf.mxu0 }
 0x43d   :  { %v1228_v26 = vadd.f32 %v3230_v25, %v1227_v30  ;;  %2300 = vmatprep.mubr.msk.f32.mxu1 %vm738_vm1, %v1309_v56 }
 0x43e   :  { %v1229_v28 = vpop.f32.mrf.mxu0 }
 0x43f   :  { %v1310_v54 = vmax.f32 %v1228_v26, 0.0 }
 0x440   :  { %v1232_v50 = vpop.f32.mrf.mxu0 }
 0x441   :  { %v1233_v48 = vadd.f32 %v3230_v25, %v1232_v50  ;;  %2301 = vmatmul.mubr.msk.f32.gmra.mxu1 %vm738_vm1, %v1310_v54 }
 0x442   :  { %v1234_v52 = vpop.f32.mrf.mxu0 }
 0x443   :  { %v1311_v2 = vmax.f32 %v1233_v48, 0.0 }
 0x444   :  { %v1237_v23 = vpop.f32.mrf.mxu0 }
 0x445   :  { %v1238_v58 = vadd.f32 %v3230_v25, %v1237_v23  ;;  %2303 = vmatprep.mubr.msk.f32.mxu1 %vm738_vm1, %v1311_v2 }
 0x446   :  { %v1239_v18 = vpop.f32.mrf.mxu0 }
 0x447   :  { %v1312_v20 = vmax.f32 %v1238_v58, 0.0 }
 0x448   :  { %v1242_v46 = vpop.f32.mrf.mxu0 }
 0x449   :  { %v1243_v9 = vadd.f32 %v3230_v25, %v1242_v46  ;;  %2304 = vmatmul.mubr.msk.f32.gmra.mxu1 %vm738_vm1, %v1312_v20 }
 0x44a   :  { %v1244_v12 = vpop.f32.mrf.mxu0 }
 0x44b   :  { %v1313_v14 = vmax.f32 %v1243_v9, 0.0 }
 0x44c   :  { %v1247_v8 = vpop.f32.mrf.mxu0 }
 0x44d   :  { %v1248_v10 = vadd.f32 %v3230_v25, %v1247_v8  ;;  %2306 = vmatprep.mubr.msk.f32.mxu1 %vm738_vm1, %v1313_v14 }
 0x44e   :  { %v1249_v13 = vpop.f32.mrf.mxu0 }
 0x44f   :  { %v1314_v15 = vmax.f32 %v1248_v10, 0.0 }
 0x450   :  { %v1252_v17 = vpop.f32.mrf.mxu0 }
 0x451   :  { %v1253_v19 = vadd.f32 %v3230_v25, %v1252_v17  ;;  %2307 = vmatmul.mubr.msk.f32.gmra.mxu1 %vm738_vm1, %v1314_v15 }
 0x452   :  { %v1254_v22 = vpop.f32.mrf.mxu0 }
 0x453   :  { %v1315_v24 = vmax.f32 %v1253_v19, 0.0 }
 0x454   :  { %v1257_v27 = vpop.f32.mrf.mxu0 }
 0x455   :  { %v1258_v29 = vadd.f32 %v3230_v25, %v1257_v27  ;;  %2309 = vmatprep.mubr.msk.f32.mxu1 %vm738_vm1, %v1315_v24  ;;  %v2391_v24 = vld [vmem:[#allocation2] sm:$0xff]  ;;  %v2392_v27 = vld [vmem:[#allocation2 + $0x18] sm:$0xff] }
 0x456   :  { %v1259_v31 = vpop.f32.mrf.mxu0 }
 0x457   :  { %v1316_v33 = vmax.f32 %v1258_v29, 0.0  ;;  %v2393_v29 = vld [vmem:[#allocation2 + $0x10] sm:$0xff]  ;;  %v2394_v31 = vld [vmem:[#allocation2 + $0x28] sm:$0xff] }
 0x458   :  { %v1262_v35 = vpop.f32.mrf.mxu0 }
 0x459   :  { %v1263_v39 = vadd.f32 %v3230_v25, %v1262_v35  ;;  %2310 = vmatmul.mubr.msk.f32.gmra.mxu1 %vm738_vm1, %v1316_v33  ;;  %v2395_v33 = vld [vmem:[#allocation2 + $0x20] sm:$0xff]  ;;  %v2396_v35 = vld [vmem:[#allocation2 + $0x38] sm:$0xff] }
 0x45a   :  { %v1264_v41 = vpop.f32.mrf.mxu0 }
 0x45b   :  { %v1317_v43 = vmax.f32 %v1263_v39, 0.0  ;;  %v2397_v39 = vld [vmem:[#allocation2 + $0x30] sm:$0xff]  ;;  %v2398_v41 = vld [vmem:[#allocation2 + $0x48] sm:$0xff] }
 0x45c   :  { %v1267_v45 = vpop.f32.mrf.mxu0 }
 0x45d   :  { %v1268_v47 = vadd.f32 %v3230_v25, %v1267_v45  ;;  %2312 = vmatprep.mubr.msk.f32.mxu1 %vm738_vm1, %v1317_v43  ;;  %v2399_v43 = vld [vmem:[#allocation2 + $0x40] sm:$0xff]  ;;  %v2401_v45 = vld [vmem:[#allocation2 + $0x50] sm:$0xff] }
 0x45e   :  { %v1269_v49 = vpop.f32.mrf.mxu0 }
 0x45f   :  { %v1318_v51 = vmax.f32 %v1268_v47, 0.0  ;;  %v2402_v47 = vld [vmem:[#allocation2 + $0x68] sm:$0xff]  ;;  %v2403_v49 = vld [vmem:[#allocation2 + $0x60] sm:$0xff] }
 0x460   :  { %v1272_v53 = vpop.f32.mrf.mxu0 }
 0x461   :  { %v1273_v55 = vadd.f32 %v3230_v25, %v1272_v53  ;;  %2313 = vmatmul.mubr.msk.f32.gmra.mxu1 %vm738_vm1, %v1318_v51  ;;  %v2404_v51 = vld [vmem:[#allocation2 + $0x78] sm:$0xff]  ;;  %v2405_v53 = vld [vmem:[#allocation2 + $0x70] sm:$0xff] }
 0x462   :  { %v1274_v57 = vpop.f32.mrf.mxu0 }
 0x463   :  { %v1319_v59 = vmax.f32 %v1273_v55, 0.0  ;;  %v2406_v55 = vld [vmem:[#allocation2 + $0x88] sm:$0xff]  ;;  %v2407_v57 = vld [vmem:[#allocation2 + $0x80] sm:$0xff] }
 0x464   :  { %v1277_v61 = vpop.f32.mrf.mxu0 }
 0x465   :  { %v1278_v63 = vadd.f32 %v3230_v25, %v1277_v61  ;;  %2315 = vmatprep.mubr.msk.f32.mxu1 %vm738_vm1, %v1319_v59  ;;  %v2408_v59 = vld [vmem:[#allocation2 + $0x98] sm:$0xff]  ;;  %v2409_v61 = vld [vmem:[#allocation2 + $0x90] sm:$0xff] }
 0x466   :  { %v1279_v1 = vpop.f32.mrf.mxu0 }
 0x467   :  { %v1320_v3 = vmax.f32 %v1278_v63, 0.0  ;;  %v2410_v63 = vld [vmem:[#allocation2 + $0xa8] sm:$0xff]  ;;  %v2411_v1 = vld [vmem:[#allocation2 + $0xa0] sm:$0xff] }
 0x468   :  { %v1282_v5 = vpop.f32.mrf.mxu0 }
 0x469   :  { %v1283_v36 = vadd.f32 %v3230_v25, %v1282_v5  ;;  %2316 = vmatmul.mubr.msk.f32.gmra.mxu1 %vm738_vm1, %v1320_v3  ;;  %v2412_v3 = vld [vmem:[#allocation2 + $0xb8] sm:$0xff]  ;;  %v2413_v5 = vld [vmem:[#allocation2 + $0xb0] sm:$0xff] }
 0x46a   :  { %v1284_v4 = vpop.f32.mrf.mxu0 }
 0x46b   :  { %v1321_v44 = vmax.f32 %v1283_v36, 0.0  ;;  %v2414_v36 = vld [vmem:[#allocation2 + $0xc8] sm:$0xff]  ;;  %v2415_v4 = vld [vmem:[#allocation2 + $0xc0] sm:$0xff] }
 0x46c   :  { %v1287_v42 = vpop.f32.mrf.mxu0 }
 0x46d   :  { %v1288_v11 = vadd.f32 %v3230_v25, %v1287_v42  ;;  %2318 = vmatprep.mubr.msk.f32.mxu1 %vm738_vm1, %v1321_v44  ;;  %v2416_v44 = vld [vmem:[#allocation2 + $0xd8] sm:$0xff]  ;;  %v2417_v42 = vld [vmem:[#allocation2 + $0xd0] sm:$0xff] }
 0x46e   :  { %v1289_v62 = vpop.f32.mrf.mxu0 }
 0x46f   :  { %v1322_v40 = vmax.f32 %v1288_v11, 0.0  ;;  %v2418_v11 = vld [vmem:[#allocation2 + $0xe8] sm:$0xff]  ;;  %v2419_v62 = vld [vmem:[#allocation2 + $0xe0] sm:$0xff] }
 0x471   :  { %2319 = vmatmul.mubr.msk.f32.gmra.mxu1 %vm738_vm1, %v1322_v40  ;;  %v2420_v40 = vld [vmem:[#allocation2 + $0xf0] sm:$0xff] }
 0x472   :  { %1723 = vmatprep.mubr.f32.mxu1 %v2390_v38  ;;  %v2421_v38 = vld [vmem:[#allocation2 + $0x108] sm:$0xff] }
 0x4b9   :  { %v2275_v21 = vpop.f32.mrf.mxu1 }
 0x4bb   :  { %v1494_v37 = vpop.f32.mrf.mxu1 }
 0x4c1   :  { %v2278_v0 = vpop.f32.mrf.mxu1 }
 0x4c3   :  { %v1504_v34 = vpop.f32.mrf.mxu1 }
 0x4c9   :  { %v2281_v6 = vpop.f32.mrf.mxu1 }
 0x4cb   :  { %v1514_v60 = vpop.f32.mrf.mxu1 }
 0x4d1   :  { %v2284_v32 = vpop.f32.mrf.mxu1 }
 0x4d3   :  { %v1524_v56 = vpop.f32.mrf.mxu1 }
 0x4d9   :  { %v2287_v30 = vpop.f32.mrf.mxu1 }
 0x4db   :  { %v1534_v26 = vpop.f32.mrf.mxu1 }
 0x4e1   :  { %v2290_v28 = vpop.f32.mrf.mxu1 }
 0x4e3   :  { %v1544_v25 = vpop.f32.mrf.mxu1 }
 0x4e9   :  { %v2293_v54 = vpop.f32.mrf.mxu1 }
 0x4eb   :  { %v1554_v50 = vpop.f32.mrf.mxu1 }
 0x4f1   :  { %v2296_v48 = vpop.f32.mrf.mxu1 }
 0x4f2   :  { %1660 = vmatpush1.msra.mxu1 %v2296_v48  ;;  %v2437_v48 = vld [vmem:[#allocation2 + $0x188] sm:$0xff] }
 0x4f3   :  { %v1564_v52 = vpop.f32.mrf.mxu1  ;;  %1661 = vmatprep.subr.mxu1 %v3562_v16 }
 0x4f4   :  { %1662 = vmatpush1.msra.mxu1 %v1564_v52  ;;  %v2438_v52 = vld [vmem:[#allocation2 + $0x180] sm:$0xff] }
 0x4f5   :  { %1663 = vmatprep.subr.mxu1 %v3562_v16 }
 0x4f6   :  { %1664 = vmatpush1.msra.mxu1 %v2293_v54  ;;  %v2435_v54 = vld [vmem:[#allocation2 + $0x178] sm:$0xff] }
 0x4f7   :  { %1665 = vmatprep.subr.mxu1 %v3562_v16 }
 0x4f8   :  { %1666 = vmatpush1.msra.mxu1 %v1554_v50  ;;  %v2436_v50 = vld [vmem:[#allocation2 + $0x170] sm:$0xff] }
 0x4f9   :  { %1667 = vmatprep.subr.mxu1 %v3562_v16  ;;  %v2299_v2 = vpop.f32.mrf.mxu1 }
 0x4fa   :  { %1668 = vmatpush1.msra.mxu1 %v2290_v28  ;;  %v2433_v28 = vld [vmem:[#allocation2 + $0x168] sm:$0xff] }
 0x4fb   :  { %1669 = vmatprep.subr.mxu1 %v3562_v16  ;;  %v1574_v23 = vpop.f32.mrf.mxu1 }
 0x4fc   :  { %1670 = vmatpush1.msra.mxu1 %v1544_v25  ;;  %v2434_v25 = vld [vmem:[#allocation2 + $0x160] sm:$0xff] }
 0x4fd   :  { %1671 = vmatprep.subr.mxu1 %v3562_v16 }
 0x4fe   :  { %1672 = vmatpush1.msra.mxu1 %v2287_v30  ;;  %v2431_v30 = vld [vmem:[#allocation2 + $0x158] sm:$0xff] }
 0x4ff   :  { %1673 = vmatprep.subr.mxu1 %v3562_v16 }
 0x500   :  { %1674 = vmatpush1.msra.mxu1 %v1534_v26  ;;  %v2432_v26 = vld [vmem:[#allocation2 + $0x150] sm:$0xff] }
 0x501   :  { %1675 = vmatprep.subr.mxu1 %v3562_v16  ;;  %v2302_v58 = vpop.f32.mrf.mxu1 }
 0x502   :  { %1676 = vmatpush1.msra.mxu1 %v2284_v32  ;;  %v2428_v32 = vld [vmem:[#allocation2 + $0x130] sm:$0xff] }
 0x503   :  { %1677 = vmatprep.subr.mxu1 %v3562_v16  ;;  %v1584_v18 = vpop.f32.mrf.mxu1 }
 0x504   :  { %1678 = vmatpush1.msra.mxu1 %v1524_v56  ;;  %v2429_v56 = vld [vmem:[#allocation2 + $0x148] sm:$0xff] }
 0x505   :  { %1679 = vmatprep.subr.mxu1 %v3562_v16 }
 0x506   :  { %1680 = vmatpush1.msra.mxu1 %v2281_v6  ;;  %v2426_v6 = vld [vmem:[#allocation2 + $0x120] sm:$0xff] }
 0x507   :  { %1681 = vmatprep.subr.mxu1 %v3562_v16 }
 0x508   :  { %1682 = vmatpush1.msra.mxu1 %v1514_v60  ;;  %v2427_v60 = vld [vmem:[#allocation2 + $0x138] sm:$0xff] }
 0x509   :  { %1683 = vmatprep.subr.mxu1 %v3562_v16  ;;  %v2305_v20 = vpop.f32.mrf.mxu1 }
 0x50a   :  { %1684 = vmatpush1.msra.mxu1 %v2278_v0  ;;  %v2424_v0 = vld [vmem:[#allocation2 + $0x110] sm:$0xff] }
 0x50b   :  { %1685 = vmatprep.subr.mxu1 %v3562_v16  ;;  %v1594_v46 = vpop.f32.mrf.mxu1 }
 0x50c   :  { %1686 = vmatpush1.msra.mxu1 %v1504_v34  ;;  %v2425_v34 = vld [vmem:[#allocation2 + $0x128] sm:$0xff] }
 0x50d   :  { %1687 = vmatprep.subr.mxu1 %v3562_v16 }
 0x50e   :  { %1688 = vmatpush1.msra.mxu1 %v2275_v21  ;;  %v2422_v21 = vld [vmem:[#allocation2 + $0x100] sm:$0xff] }
 0x50f   :  { %1689 = vmatprep.subr.mxu1 %v3562_v16 }
 0x510   :  { %1690 = vmatpush1.msra.mxu1 %v1494_v37  ;;  %v2423_v37 = vld [vmem:[#allocation2 + $0x118] sm:$0xff] }
 0x511   :  { %1691 = vmatprep.subr.mxu1 %v3562_v16  ;;  %v2308_v9 = vpop.f32.mrf.mxu1 }
 0x513   :  { %v1604_v12 = vpop.f32.mrf.mxu1 }
 0x519   :  { %v2311_v14 = vpop.f32.mrf.mxu1 }
 0x51b   :  { %v1614_v8 = vpop.f32.mrf.mxu1 }
 0x521   :  { %v2314_v10 = vpop.f32.mrf.mxu1 }
 0x523   :  { %v1624_v13 = vpop.f32.mrf.mxu1 }
 0x529   :  { %v2317_v15 = vpop.f32.mrf.mxu1 }
 0x52b   :  { %v1634_v17 = vpop.f32.mrf.mxu1 }
 0x531   :  { %v2320_v19 = vpop.f32.mrf.mxu1 }
 0x532   :  { %1692 = vmatpush2.msra.mxu1 %v2320_v19  ;;  %v3331_v19 = vld [vmem:[%s3500_s7] ss:$0 sm:$0xff] }
 0x533   :  { %v1644_v22 = vpop.f32.mrf.mxu1  ;;  %1693 = vmatprep.subr.mxu1 %v3562_v16 }
 0x534   :  { %1694 = vmatpush2.msra.mxu1 %v1644_v22 }
 0x535   :  { %1695 = vmatprep.subr.mxu1 %v3562_v16 }
 0x536   :  { %1696 = vmatpush2.msra.mxu1 %v2317_v15  ;;  %v2451_v15 = vld [vmem:[#allocation2 + $0x1f8] sm:$0xff] }
 0x537   :  { %1697 = vmatprep.subr.mxu1 %v3562_v16 }
 0x538   :  { %1698 = vmatpush2.msra.mxu1 %v1634_v17  ;;  %v2452_v17 = vld [vmem:[#allocation2 + $0x1f0] sm:$0xff] }
 0x539   :  { %1699 = vmatprep.subr.mxu1 %v3562_v16 }
 0x53a   :  { %1700 = vmatpush2.msra.mxu1 %v2314_v10  ;;  %v2449_v10 = vld [vmem:[#allocation2 + $0x1e8] sm:$0xff] }
 0x53b   :  { %1701 = vmatprep.subr.mxu1 %v3562_v16 }
 0x53c   :  { %1702 = vmatpush2.msra.mxu1 %v1624_v13  ;;  %v2450_v13 = vld [vmem:[#allocation2 + $0x1e0] sm:$0xff] }
 0x53d   :  { %1703 = vmatprep.subr.mxu1 %v3562_v16 }
 0x53e   :  { %1704 = vmatpush2.msra.mxu1 %v2311_v14  ;;  %v2447_v14 = vld [vmem:[#allocation2 + $0x1d8] sm:$0xff] }
 0x53f   :  { %1705 = vmatprep.subr.mxu1 %v3562_v16 }
 0x540   :  { %1706 = vmatpush2.msra.mxu1 %v1614_v8  ;;  %v2448_v8 = vld [vmem:[#allocation2 + $0x1d0] sm:$0xff] }
 0x541   :  { %1707 = vmatprep.subr.mxu1 %v3562_v16 }
 0x542   :  { %1708 = vmatpush2.msra.mxu1 %v2308_v9  ;;  %v2445_v9 = vld [vmem:[#allocation2 + $0x1c8] sm:$0xff] }
 0x543   :  { %1709 = vmatprep.subr.mxu1 %v3562_v16 }
 0x544   :  { %1710 = vmatpush2.msra.mxu1 %v1604_v12  ;;  %v2446_v12 = vld [vmem:[#allocation2 + $0x1c0] sm:$0xff] }
 0x545   :  { %1711 = vmatprep.subr.mxu1 %v3562_v16 }
 0x546   :  { %1712 = vmatpush2.msra.mxu1 %v2305_v20  ;;  %v2443_v20 = vld [vmem:[#allocation2 + $0x1b8] sm:$0xff] }
 0x547   :  { %1713 = vmatprep.subr.mxu1 %v3562_v16 }
 0x548   :  { %1714 = vmatpush2.msra.mxu1 %v1594_v46  ;;  %v2444_v46 = vld [vmem:[#allocation2 + $0x1b0] sm:$0xff] }
 0x549   :  { %1715 = vmatprep.subr.mxu1 %v3562_v16 }
 0x54a   :  { %1716 = vmatpush2.msra.mxu1 %v2302_v58  ;;  %v2441_v58 = vld [vmem:[#allocation2 + $0x1a8] sm:$0xff] }
 0x54b   :  { %1717 = vmatprep.subr.mxu1 %v3562_v16 }
 0x54c   :  { %1718 = vmatpush2.msra.mxu1 %v1584_v18  ;;  %v2442_v18 = vld [vmem:[#allocation2 + $0x1a0] sm:$0xff] }
 0x54d   :  { %1719 = vmatprep.subr.mxu1 %v3562_v16 }
 0x54e   :  { %1720 = vmatpush2.msra.mxu1 %v2299_v2  ;;  %v2439_v2 = vld [vmem:[#allocation2 + $0x198] sm:$0xff] }
 0x54f   :  { %1721 = vmatprep.subr.mxu1 %v3562_v16  ;;  %v2400_v16 = vld [vmem:[#allocation2 + $0x58] sm:$0xff] }
 0x550   :  { %1722 = vmatpush2.msra.mxu1 %v1574_v23  ;;  %v2440_v23 = vld [vmem:[#allocation2 + $0x190] sm:$0xff] }
 0x551   :  { %1724 = vmatmul.mubr.f32.vlgmr.msra.gmra.mxu1 %v2391_v24 }
 0x552   :  { %1728 = vmatprep.mubr.f32.mxu1 %v2392_v27 }
 0x555   :  { %1729 = vmatmul.mubr.f32.gmra.mxu1 %v2393_v29 }
 0x556   :  { %1733 = vmatprep.mubr.f32.mxu1 %v2394_v31 }
 0x559   :  { %1734 = vmatmul.mubr.f32.gmra.mxu1 %v2395_v33 }
 0x55a   :  { %1738 = vmatprep.mubr.f32.mxu1 %v2396_v35 }
 0x55d   :  { %1739 = vmatmul.mubr.f32.gmra.mxu1 %v2397_v39 }
 0x55e   :  { %1743 = vmatprep.mubr.f32.mxu1 %v2398_v41 }
 0x561   :  { %1744 = vmatmul.mubr.f32.gmra.mxu1 %v2399_v43 }
 0x562   :  { %1748 = vmatprep.mubr.f32.mxu1 %v2400_v16 }
 0x565   :  { %1749 = vmatmul.mubr.f32.gmra.mxu1 %v2401_v45 }
 0x566   :  { %1753 = vmatprep.mubr.f32.mxu1 %v2402_v47 }
 0x569   :  { %1754 = vmatmul.mubr.f32.gmra.mxu1 %v2403_v49 }
 0x56a   :  { %1758 = vmatprep.mubr.f32.mxu1 %v2404_v51 }
 0x56d   :  { %1759 = vmatmul.mubr.f32.gmra.mxu1 %v2405_v53 }
 0x56e   :  { %1763 = vmatprep.mubr.f32.mxu1 %v2406_v55 }
 0x571   :  { %1764 = vmatmul.mubr.f32.gmra.mxu1 %v2407_v57 }
 0x572   :  { %1768 = vmatprep.mubr.f32.mxu1 %v2408_v59 }
 0x575   :  { %1769 = vmatmul.mubr.f32.gmra.mxu1 %v2409_v61 }
 0x576   :  { %1773 = vmatprep.mubr.f32.mxu1 %v2410_v63 }
 0x579   :  { %1774 = vmatmul.mubr.f32.gmra.mxu1 %v2411_v1 }
 0x57a   :  { %1778 = vmatprep.mubr.f32.mxu1 %v2412_v3 }
 0x57d   :  { %1779 = vmatmul.mubr.f32.gmra.mxu1 %v2413_v5 }
 0x57e   :  { %1783 = vmatprep.mubr.f32.mxu1 %v2414_v36 }
 0x581   :  { %1784 = vmatmul.mubr.f32.gmra.mxu1 %v2415_v4 }
 0x582   :  { %1788 = vmatprep.mubr.f32.mxu1 %v2416_v44 }
 0x585   :  { %1789 = vmatmul.mubr.f32.gmra.mxu1 %v2417_v42 }
 0x586   :  { %1793 = vmatprep.mubr.f32.mxu1 %v2418_v11 }
 0x589   :  { %1794 = vmatmul.mubr.f32.gmra.mxu1 %v2419_v62 }
 0x58a   :  { %1798 = vmatprep.mubr.f32.mxu1 %v3178_v7  ;;  %v2430_v7 = vld [vmem:[#allocation2 + $0x140] sm:$0xff] }
 0x58d   :  { %1799 = vmatmul.mubr.f32.gmra.mxu1 %v2420_v40 }
 0x58e   :  { %1803 = vmatprep.mubr.f32.mxu1 %v2421_v38 }
 0x591   :  { %1804 = vmatmul.mubr.f32.gmra.mxu1 %v2422_v21 }
 0x592   :  { %1808 = vmatprep.mubr.f32.mxu1 %v2423_v37 }
 0x595   :  { %1809 = vmatmul.mubr.f32.gmra.mxu1 %v2424_v0 }
 0x596   :  { %1813 = vmatprep.mubr.f32.mxu1 %v2425_v34 }
 0x599   :  { %1814 = vmatmul.mubr.f32.gmra.mxu1 %v2426_v6 }
 0x59a   :  { %1818 = vmatprep.mubr.f32.mxu1 %v2427_v60 }
 0x59d   :  { %1819 = vmatmul.mubr.f32.gmra.mxu1 %v2428_v32 }
 0x59e   :  { %1823 = vmatprep.mubr.f32.mxu1 %v2429_v56 }
 0x5a1   :  { %1824 = vmatmul.mubr.f32.gmra.mxu1 %v2430_v7 }
 0x5a2   :  { %1828 = vmatprep.mubr.f32.mxu1 %v2431_v30 }
 0x5a5   :  { %1829 = vmatmul.mubr.f32.gmra.mxu1 %v2432_v26 }
 0x5a6   :  { %1833 = vmatprep.mubr.f32.mxu1 %v2433_v28 }
 0x5a9   :  { %1834 = vmatmul.mubr.f32.gmra.mxu1 %v2434_v25 }
 0x5aa   :  { %1838 = vmatprep.mubr.f32.mxu1 %v2435_v54 }
 0x5ad   :  { %1839 = vmatmul.mubr.f32.gmra.mxu1 %v2436_v50 }
 0x5ae   :  { %1843 = vmatprep.mubr.f32.mxu1 %v2437_v48 }
 0x5b1   :  { %1844 = vmatmul.mubr.f32.gmra.mxu1 %v2438_v52 }
 0x5b2   :  { %1848 = vmatprep.mubr.f32.mxu1 %v2439_v2 }
 0x5b5   :  { %1849 = vmatmul.mubr.f32.gmra.mxu1 %v2440_v23 }
 0x5b6   :  { %1853 = vmatprep.mubr.f32.mxu1 %v2441_v58 }
 0x5b9   :  { %1854 = vmatmul.mubr.f32.gmra.mxu1 %v2442_v18 }
 0x5ba   :  { %1858 = vmatprep.mubr.f32.mxu1 %v2443_v20 }
 0x5bd   :  { %1859 = vmatmul.mubr.f32.gmra.mxu1 %v2444_v46 }
 0x5be   :  { %1863 = vmatprep.mubr.f32.mxu1 %v2445_v9 }
 0x5c1   :  { %1864 = vmatmul.mubr.f32.gmra.mxu1 %v2446_v12 }
 0x5c2   :  { %1868 = vmatprep.mubr.f32.mxu1 %v2447_v14 }
 0x5c5   :  { %1869 = vmatmul.mubr.f32.gmra.mxu1 %v2448_v8 }
 0x5c6   :  { %1873 = vmatprep.mubr.f32.mxu1 %v2449_v10 }
 0x5c9   :  { %1874 = vmatmul.mubr.f32.gmra.mxu1 %v2450_v13 }
 0x5ca   :  { %1878 = vmatprep.mubr.f32.mxu1 %v2451_v15 }
 0x5cd   :  { %1879 = vmatmul.mubr.f32.gmra.mxu1 %v2452_v17 }
 0x611   :  { %v1725_v22 = vpop.f32.mrf.mxu1 }
 0x612   :  { %v1726_v24 = vadd.f32 %v3331_v19, %v1725_v22 }
 0x613   :  { %v1727_v27 = vpop.f32.mrf.mxu1 }
 0x614   :  { %1885 = vst.msk [vmem:[%s3501_s8] sm:$0xff] %vm1884_vm2, %v1726_v24 }
 0x615   :  { %v1730_v29 = vpop.f32.mrf.mxu1 }
 0x616   :  { %v1731_v31 = vadd.f32 %v3331_v19, %v1730_v29 }
 0x617   :  { %v1732_v33 = vpop.f32.mrf.mxu1 }
 0x618   :  { %1886 = vst.msk [vmem:[%s3501_s8 + $0x8] sm:$0xff] %vm1884_vm2, %v1731_v31 }
 0x619   :  { %v1735_v35 = vpop.f32.mrf.mxu1 }
 0x61a   :  { %v1736_v39 = vadd.f32 %v3331_v19, %v1735_v35 }
 0x61b   :  { %v1737_v41 = vpop.f32.mrf.mxu1 }
 0x61c   :  { %1887 = vst.msk [vmem:[%s3501_s8 + $0x10] sm:$0xff] %vm1884_vm2, %v1736_v39 }
 0x61d   :  { %v1740_v43 = vpop.f32.mrf.mxu1 }
 0x61e   :  { %v1741_v16 = vadd.f32 %v3331_v19, %v1740_v43 }
 0x61f   :  { %v1742_v45 = vpop.f32.mrf.mxu1 }
 0x620   :  { %1888 = vst.msk [vmem:[%s3501_s8 + $0x18] sm:$0xff] %vm1884_vm2, %v1741_v16 }
 0x621   :  { %v1745_v47 = vpop.f32.mrf.mxu1 }
 0x622   :  { %v1746_v49 = vadd.f32 %v3331_v19, %v1745_v47 }
 0x623   :  { %v1747_v51 = vpop.f32.mrf.mxu1 }
 0x624   :  { %1889 = vst.msk [vmem:[%s3501_s8 + $0x20] sm:$0xff] %vm1884_vm2, %v1746_v49 }
 0x625   :  { %v1750_v53 = vpop.f32.mrf.mxu1 }
 0x626   :  { %v1751_v55 = vadd.f32 %v3331_v19, %v1750_v53 }
 0x627   :  { %v1752_v57 = vpop.f32.mrf.mxu1 }
 0x628   :  { %1890 = vst.msk [vmem:[%s3501_s8 + $0x28] sm:$0xff] %vm1884_vm2, %v1751_v55 }
 0x629   :  { %v1755_v59 = vpop.f32.mrf.mxu1 }
 0x62a   :  { %v1756_v61 = vadd.f32 %v3331_v19, %v1755_v59 }
 0x62b   :  { %v1757_v63 = vpop.f32.mrf.mxu1 }
 0x62c   :  { %1891 = vst.msk [vmem:[%s3501_s8 + $0x30] sm:$0xff] %vm1884_vm2, %v1756_v61 }
 0x62d   :  { %v1760_v1 = vpop.f32.mrf.mxu1 }
 0x62e   :  { %v1761_v3 = vadd.f32 %v3331_v19, %v1760_v1 }
 0x62f   :  { %v1762_v5 = vpop.f32.mrf.mxu1 }
 0x630   :  { %1892 = vst.msk [vmem:[%s3501_s8 + $0x38] sm:$0xff] %vm1884_vm2, %v1761_v3 }
 0x631   :  { %v1765_v36 = vpop.f32.mrf.mxu1 }
 0x632   :  { %v1766_v4 = vadd.f32 %v3331_v19, %v1765_v36 }
 0x633   :  { %v1767_v44 = vpop.f32.mrf.mxu1 }
 0x634   :  { %1893 = vst.msk [vmem:[%s3501_s8 + $0x40] sm:$0xff] %vm1884_vm2, %v1766_v4 }
 0x635   :  { %v1770_v42 = vpop.f32.mrf.mxu1 }
 0x636   :  { %v1771_v11 = vadd.f32 %v3331_v19, %v1770_v42 }
 0x637   :  { %v1772_v62 = vpop.f32.mrf.mxu1 }
 0x638   :  { %1894 = vst.msk [vmem:[%s3501_s8 + $0x48] sm:$0xff] %vm1884_vm2, %v1771_v11 }
 0x639   :  { %v1775_v40 = vpop.f32.mrf.mxu1 }
 0x63a   :  { %v1776_v38 = vadd.f32 %v3331_v19, %v1775_v40 }
 0x63b   :  { %v1777_v21 = vpop.f32.mrf.mxu1 }
 0x63c   :  { %1895 = vst.msk [vmem:[%s3501_s8 + $0x50] sm:$0xff] %vm1884_vm2, %v1776_v38 }
 0x63d   :  { %v1780_v37 = vpop.f32.mrf.mxu1 }
 0x63e   :  { %v1781_v0 = vadd.f32 %v3331_v19, %v1780_v37 }
 0x63f   :  { %v1782_v34 = vpop.f32.mrf.mxu1 }
 0x640   :  { %1896 = vst.msk [vmem:[%s3501_s8 + $0x58] sm:$0xff] %vm1884_vm2, %v1781_v0 }
 0x641   :  { %v1785_v6 = vpop.f32.mrf.mxu1 }
 0x642   :  { %v1786_v60 = vadd.f32 %v3331_v19, %v1785_v6 }
 0x643   :  { %v1787_v32 = vpop.f32.mrf.mxu1 }
 0x644   :  { %1897 = vst.msk [vmem:[%s3501_s8 + $0x60] sm:$0xff] %vm1884_vm2, %v1786_v60 }
 0x645   :  { %v1790_v56 = vpop.f32.mrf.mxu1 }
 0x646   :  { %v1791_v7 = vadd.f32 %v3331_v19, %v1790_v56 }
 0x647   :  { %v1792_v30 = vpop.f32.mrf.mxu1 }
 0x648   :  { %1898 = vst.msk [vmem:[%s3501_s8 + $0x68] sm:$0xff] %vm1884_vm2, %v1791_v7 }
 0x649   :  { %v1795_v26 = vpop.f32.mrf.mxu1 }
 0x64a   :  { %v1796_v28 = vadd.f32 %v3331_v19, %v1795_v26 }
 0x64b   :  { %v1797_v25 = vpop.f32.mrf.mxu1 }
 0x64c   :  { %1899 = vst.msk [vmem:[%s3501_s8 + $0x70] sm:$0xff] %vm1884_vm2, %v1796_v28 }
 0x64d   :  { %v1800_v54 = vpop.f32.mrf.mxu1 }
 0x64e   :  { %v1801_v50 = vadd.f32 %v3331_v19, %v1800_v54 }
 0x64f   :  { %v1802_v48 = vpop.f32.mrf.mxu1 }
 0x650   :  { %1900 = vst.msk [vmem:[%s3501_s8 + $0x78] sm:$0xff] %vm1884_vm2, %v1801_v50 }
 0x651   :  { %v1805_v52 = vpop.f32.mrf.mxu1 }
 0x652   :  { %v1806_v2 = vadd.f32 %v3331_v19, %v1805_v52 }
 0x653   :  { %v1807_v23 = vpop.f32.mrf.mxu1 }
 0x654   :  { %1901 = vst.msk [vmem:[%s3501_s8 + $0x80] sm:$0xff] %vm1884_vm2, %v1806_v2 }
 0x655   :  { %v1810_v58 = vpop.f32.mrf.mxu1 }
 0x656   :  { %v1811_v18 = vadd.f32 %v3331_v19, %v1810_v58 }
 0x657   :  { %v1812_v20 = vpop.f32.mrf.mxu1 }
 0x658   :  { %1902 = vst.msk [vmem:[%s3501_s8 + $0x88] sm:$0xff] %vm1884_vm2, %v1811_v18 }
 0x659   :  { %v1815_v46 = vpop.f32.mrf.mxu1 }
 0x65a   :  { %v1816_v9 = vadd.f32 %v3331_v19, %v1815_v46 }
 0x65b   :  { %v1817_v12 = vpop.f32.mrf.mxu1 }
 0x65c   :  { %1903 = vst.msk [vmem:[%s3501_s8 + $0x90] sm:$0xff] %vm1884_vm2, %v1816_v9 }
 0x65d   :  { %v1820_v14 = vpop.f32.mrf.mxu1 }
 0x65e   :  { %v1821_v8 = vadd.f32 %v3331_v19, %v1820_v14 }
 0x65f   :  { %v1822_v10 = vpop.f32.mrf.mxu1 }
 0x660   :  { %1904 = vst.msk [vmem:[%s3501_s8 + $0x98] sm:$0xff] %vm1884_vm2, %v1821_v8 }
 0x661   :  { %v1825_v13 = vpop.f32.mrf.mxu1 }
 0x662   :  { %v1826_v15 = vadd.f32 %v3331_v19, %v1825_v13 }
 0x663   :  { %v1827_v17 = vpop.f32.mrf.mxu1 }
 0x664   :  { %1905 = vst.msk [vmem:[%s3501_s8 + $0xa0] sm:$0xff] %vm1884_vm2, %v1826_v15 }
 0x665   :  { %v1830_v22 = vpop.f32.mrf.mxu1 }
 0x666   :  { %v1831_v24 = vadd.f32 %v3331_v19, %v1830_v22 }
 0x667   :  { %v1832_v27 = vpop.f32.mrf.mxu1 }
 0x668   :  { %1906 = vst.msk [vmem:[%s3501_s8 + $0xa8] sm:$0xff] %vm1884_vm2, %v1831_v24 }
 0x669   :  { %v1835_v29 = vpop.f32.mrf.mxu1 }
 0x66a   :  { %v1836_v31 = vadd.f32 %v3331_v19, %v1835_v29 }
 0x66b   :  { %v1837_v33 = vpop.f32.mrf.mxu1 }
 0x66c   :  { %1907 = vst.msk [vmem:[%s3501_s8 + $0xb0] sm:$0xff] %vm1884_vm2, %v1836_v31 }
 0x66d   :  { %v1840_v35 = vpop.f32.mrf.mxu1 }
 0x66e   :  { %v1841_v39 = vadd.f32 %v3331_v19, %v1840_v35 }
 0x66f   :  { %v1842_v41 = vpop.f32.mrf.mxu1 }
 0x670   :  { %1908 = vst.msk [vmem:[%s3501_s8 + $0xb8] sm:$0xff] %vm1884_vm2, %v1841_v39 }
 0x671   :  { %v1845_v43 = vpop.f32.mrf.mxu1 }
 0x672   :  { %v1846_v16 = vadd.f32 %v3331_v19, %v1845_v43 }
 0x673   :  { %v1847_v45 = vpop.f32.mrf.mxu1 }
 0x674   :  { %1909 = vst.msk [vmem:[%s3501_s8 + $0xc0] sm:$0xff] %vm1884_vm2, %v1846_v16 }
 0x675   :  { %v1850_v47 = vpop.f32.mrf.mxu1 }
 0x676   :  { %v1851_v49 = vadd.f32 %v3331_v19, %v1850_v47 }
 0x677   :  { %v1852_v51 = vpop.f32.mrf.mxu1 }
 0x678   :  { %1910 = vst.msk [vmem:[%s3501_s8 + $0xc8] sm:$0xff] %vm1884_vm2, %v1851_v49 }
 0x679   :  { %v1855_v53 = vpop.f32.mrf.mxu1 }
 0x67a   :  { %v1856_v55 = vadd.f32 %v3331_v19, %v1855_v53 }
 0x67b   :  { %v1857_v57 = vpop.f32.mrf.mxu1 }
 0x67c   :  { %1911 = vst.msk [vmem:[%s3501_s8 + $0xd0] sm:$0xff] %vm1884_vm2, %v1856_v55 }
 0x67d   :  { %v1860_v59 = vpop.f32.mrf.mxu1 }
 0x67e   :  { %v1861_v61 = vadd.f32 %v3331_v19, %v1860_v59 }
 0x67f   :  { %v1862_v63 = vpop.f32.mrf.mxu1 }
 0x680   :  { %1912 = vst.msk [vmem:[%s3501_s8 + $0xd8] sm:$0xff] %vm1884_vm2, %v1861_v61 }
 0x681   :  { %v1865_v1 = vpop.f32.mrf.mxu1 }
 0x682   :  { %v1866_v3 = vadd.f32 %v3331_v19, %v1865_v1 }
 0x683   :  { %v1867_v5 = vpop.f32.mrf.mxu1 }
 0x684   :  { %1913 = vst.msk [vmem:[%s3501_s8 + $0xe0] sm:$0xff] %vm1884_vm2, %v1866_v3 }
 0x685   :  { %v1870_v36 = vpop.f32.mrf.mxu1 }
 0x686   :  { %v1871_v4 = vadd.f32 %v3331_v19, %v1870_v36 }
 0x687   :  { %v1872_v44 = vpop.f32.mrf.mxu1 }
 0x688   :  { %1914 = vst.msk [vmem:[%s3501_s8 + $0xe8] sm:$0xff] %vm1884_vm2, %v1871_v4 }
 0x689   :  { %v1875_v42 = vpop.f32.mrf.mxu1 }
 0x68a   :  { %v1876_v11 = vadd.f32 %v3331_v19, %v1875_v42 }
 0x68b   :  { %v1877_v62 = vpop.f32.mrf.mxu1 }
 0x68c   :  { %1915 = vst.msk [vmem:[%s3501_s8 + $0xf0] sm:$0xff] %vm1884_vm2, %v1876_v11 }
 0x68d   :  { %v1880_v40 = vpop.f32.mrf.mxu1 }
 0x68e   :  { %v1881_v38 = vadd.f32 %v3331_v19, %v1880_v40 }
 0x68f   :  { %v1882_v21 = vpop.f32.mrf.mxu1 }
 0x690   :  { %1916 = vst.msk [vmem:[%s3501_s8 + $0xf8] sm:$0xff] %vm1884_vm2, %v1881_v38 }
 0x691   :  { %1921 = vsyncpa [#allocation3], 1 }

</bundles_post_ra>
